<compile_context>
chip_gen: v6e
topology: v6e:2x2x1
jax: 0.10.0
libtpu: 0.0.40
codegen_flags: <defaults>
</compile_context>

<pallas_src>
import functools

import jax
import jax.numpy as jnp
from jax.experimental import pallas as pl
from jax.experimental.pallas import tpu as pltpu


def _round_up(x, m):
    return ((x + m - 1) // m) * m


def _mlp_kernel(*refs, bias_slices, dot_dtype):
    """Fused 6-layer MLP: (Linear -> ReLU) x 5 -> Linear.

    refs = (x_ref, w1_ref, ..., w6_ref, bias_slab_ref, out_ref)
    Weights are pre-transposed to (in_pad, out_pad) and pre-cast to dot_dtype.
    Biases live in one (1, sum_out_pad) f32 slab, sliced with static offsets.
    """
    x_ref, out_ref = refs[0], refs[-1]
    b_ref = refs[-2]
    w_refs = refs[1:-2]
    n_layers = len(w_refs)

    h = x_ref[...]                                              # (bt, f_pad) f32
    for i, w_ref in enumerate(w_refs):
        off, width = bias_slices[i]
        # bf16 operands, f32 accumulation on the MXU.
        y = jnp.dot(h.astype(dot_dtype), w_ref[...],
                    preferred_element_type=jnp.float32)
        y = y + b_ref[:, off:off + width]                       # f32 bias (VPU)
        if i < n_layers - 1:
            y = jnp.maximum(y, 0.0)                             # f32 ReLU
        h = y

    out_ref[...] = h.astype(out_ref.dtype)


def mlp_forward(x, params, *, batch_tile=256, dot_dtype=jnp.bfloat16, lane=128):
    """params: list of (W, b) with W in PyTorch (out, in) layout.

    batch_tile: rows per grid step (tune per generation: 128 on v5e,
    256 on v6e/v7x). Widths are padded to multiples of `lane` (128).
    """
    x = jnp.asarray(x, jnp.float32)
    n, f = x.shape
    num_class = params[-1][0].shape[0]

    # ---- layout glue: lane-dense padding of weights / biases -------------
    f_pad = _round_up(f, lane)
    padded_ws = []
    bias_chunks = []
    bias_slices = []
    in_pad = f_pad
    off = 0
    for w, b in params:
        out_dim, in_dim = w.shape
        out_pad = _round_up(out_dim, lane)
        wt = jnp.zeros((in_pad, out_pad), jnp.float32)
        wt = wt.at[:in_dim, :out_dim].set(jnp.asarray(w, jnp.float32).T)
        padded_ws.append(wt.astype(dot_dtype))                  # halve DMA bytes
        bb = jnp.zeros((out_pad,), jnp.float32)
        bb = bb.at[:out_dim].set(jnp.asarray(b, jnp.float32))
        bias_chunks.append(bb)
        bias_slices.append((off, out_pad))
        off += out_pad
        in_pad = out_pad
    c_pad = in_pad                                              # padded num_class
    b_all = jnp.concatenate(bias_chunks).reshape(1, -1)         # (1, sum_out_pad)

    # ---- batch tiling -----------------------------------------------------
    bt = max(8, min(_round_up(batch_tile, 8), _round_up(n, 8)))
    n_pad = _round_up(n, bt)
    x_p = jnp.zeros((n_pad, f_pad), jnp.float32).at[:n, :f].set(x)

    grid = (n_pad // bt,)
    in_specs = (
        [pl.BlockSpec((bt, f_pad), lambda i: (i, 0))]
        + [pl.BlockSpec(w.shape, lambda i: (0, 0)) for w in padded_ws]
        + [pl.BlockSpec(b_all.shape, lambda i: (0, 0))]
    )
    out_specs = pl.BlockSpec((bt, c_pad), lambda i: (i, 0))

    kernel = functools.partial(
        _mlp_kernel, bias_slices=tuple(bias_slices), dot_dtype=dot_dtype)

    out_p = pl.pallas_call(
        kernel,
        out_shape=jax.ShapeDtypeStruct((n_pad, c_pad), jnp.float32),
        grid_spec=pltpu.PrefetchScalarGridSpec(
            num_scalar_prefetch=0,
            grid=grid,
            in_specs=in_specs,
            out_specs=out_specs,
        ),
        compiler_params=pltpu.CompilerParams(
            dimension_semantics=("parallel",),
        ),
    )(x_p, *padded_ws, b_all)

    # Strip batch / class padding (pure slicing).
    return out_p[:n, :num_class]


def _init_params(key, dims):
    """Deterministic PyTorch-nn.Linear-style init: U(-1/sqrt(in), 1/sqrt(in))."""
    params = []
    for fan_in, fan_out in zip(dims[:-1], dims[1:]):
        key, kw, kb = jax.random.split(key, 3)
        bound = 1.0 / (fan_in ** 0.5)
        w = jax.random.uniform(kw, (fan_out, fan_in), jnp.float32, -bound, bound)
        b = jax.random.uniform(kb, (fan_out,), jnp.float32, -bound, bound)
        params.append((w, b))
    return params


def _reference_forward(x, params, dot_dtype=jnp.float32):
    h = jnp.asarray(x, jnp.float32)
    for i, (w, b) in enumerate(params):
        y = jnp.dot(h.astype(dot_dtype), w.T.astype(dot_dtype),
                    preferred_element_type=jnp.float32)
        y = y + b
        if i < len(params) - 1:
            y = jnp.maximum(y, 0.0)
        h = y
    return h


if __name__ == "__main__":
    # opt = {'num_feature': 32, 'hidden_dim': 16, 'num_class': 7}
    num_feature, hidden_dim, num_class = 32, 16, 7
    batch = 300                       # ragged vs. batch_tile -> exercises padding
    dims = [num_feature, 500, 250, 100, 50, hidden_dim, num_class]

    key = jax.random.PRNGKey(0)
    key, kx = jax.random.split(key)
    x = jax.random.normal(kx, (batch, num_feature), jnp.float32)
    params = _init_params(key, dims)

    out = mlp_forward(x, params, batch_tile=128)
    out = jax.block_until_ready(out)
    assert out.shape == (batch, num_class)

    # Reference with the same bf16-operand / f32-accumulate math (tight check).
    ref_match = _reference_forward(x, params, dot_dtype=jnp.bfloat16)
    assert jnp.allclose(out, ref_match, atol=2e-3, rtol=2e-3), \
        float(jnp.max(jnp.abs(out - ref_match)))

    # Pure f32 PyTorch-equivalent reference (loose check: bf16 matmul operands).
    ref_f32 = _reference_forward(x, params, dot_dtype=jnp.float32)
    assert jnp.allclose(out, ref_f32, atol=5e-2, rtol=5e-2), \
        float(jnp.max(jnp.abs(out - ref_f32)))

    print("KERNEL_OK")
</pallas_src>

<mosaic_0001>
module attributes {stable_mosaic.version = 11 : i64} {
  func.func @_mlp_kernel(%arg0: i32, %arg1: memref<128x128xf32, #tpu.memory_space<vmem>>, %arg2: memref<128x512xbf16, #tpu.memory_space<vmem>>, %arg3: memref<512x256xbf16, #tpu.memory_space<vmem>>, %arg4: memref<256x128xbf16, #tpu.memory_space<vmem>>, %arg5: memref<128x128xbf16, #tpu.memory_space<vmem>>, %arg6: memref<128x128xbf16, #tpu.memory_space<vmem>>, %arg7: memref<128x128xbf16, #tpu.memory_space<vmem>>, %arg8: memref<1x1280xf32, #tpu.memory_space<vmem>>, %arg9: memref<128x128xf32, #tpu.memory_space<vmem>>) attributes {dimension_semantics = [#tpu.dimension_semantics<parallel>], iteration_bounds = array<i64: 3>, scalar_prefetch = 0 : i64, scratch_operands = 0 : i64, tpu.core_type = #tpu.core_type<tc>, window_params = [{transform_indices = @transform_0, window_bounds = array<i64: 128, 128>}, {pipeline_mode = #tpu.pipeline_mode<synchronous>, transform_indices = @transform_1, window_bounds = array<i64: 128, 512>}, {pipeline_mode = #tpu.pipeline_mode<synchronous>, transform_indices = @transform_2, window_bounds = array<i64: 512, 256>}, {pipeline_mode = #tpu.pipeline_mode<synchronous>, transform_indices = @transform_3, window_bounds = array<i64: 256, 128>}, {pipeline_mode = #tpu.pipeline_mode<synchronous>, transform_indices = @transform_4, window_bounds = array<i64: 128, 128>}, {pipeline_mode = #tpu.pipeline_mode<synchronous>, transform_indices = @transform_5, window_bounds = array<i64: 128, 128>}, {pipeline_mode = #tpu.pipeline_mode<synchronous>, transform_indices = @transform_6, window_bounds = array<i64: 128, 128>}, {pipeline_mode = #tpu.pipeline_mode<synchronous>, transform_indices = @transform_7, window_bounds = array<i64: 1, 1280>}, {transform_indices = @transform_8, window_bounds = array<i64: 128, 128>}]} {
    %c0 = arith.constant 0 : index
    %c0_0 = arith.constant 0 : index
    %0 = vector.load %arg1[%c0, %c0_0] : memref<128x128xf32, #tpu.memory_space<vmem>>, vector<128x128xf32>
    %1 = arith.truncf %0 : vector<128x128xf32> to vector<128x128xbf16>
    %c0_1 = arith.constant 0 : index
    %c0_2 = arith.constant 0 : index
    %2 = vector.load %arg2[%c0_1, %c0_2] : memref<128x512xbf16, #tpu.memory_space<vmem>>, vector<128x512xbf16>
    %cst = arith.constant dense<0.000000e+00> : vector<128x512xf32>
    %3 = tpu.matmul %1, %2, %cst {dimension_numbers = #tpu.dot_dimension_numbers<[1], [0], [0], [1], [0, 0, 1, 1], [], []>} : vector<128x128xbf16>, vector<128x512xbf16>, vector<128x512xf32> -> vector<128x512xf32>
    %c0_3 = arith.constant 0 : index
    %c0_4 = arith.constant 0 : index
    %4 = vector.load %arg8[%c0_3, %c0_4] : memref<1x1280xf32, #tpu.memory_space<vmem>>, vector<1x512xf32>
    %5 = vector.broadcast %4 : vector<1x512xf32> to vector<128x512xf32>
    %6 = arith.addf %3, %5 : vector<128x512xf32>
    %cst_5 = arith.constant 0.000000e+00 : f32
    %7 = vector.broadcast %cst_5 : f32 to vector<128x512xf32>
    %8 = arith.maximumf %6, %7 : vector<128x512xf32>
    %9 = arith.truncf %8 : vector<128x512xf32> to vector<128x512xbf16>
    %c0_6 = arith.constant 0 : index
    %c0_7 = arith.constant 0 : index
    %10 = vector.load %arg3[%c0_6, %c0_7] : memref<512x256xbf16, #tpu.memory_space<vmem>>, vector<512x256xbf16>
    %cst_8 = arith.constant dense<0.000000e+00> : vector<128x256xf32>
    %11 = tpu.matmul %9, %10, %cst_8 {dimension_numbers = #tpu.dot_dimension_numbers<[1], [0], [0], [1], [0, 0, 1, 1], [], []>} : vector<128x512xbf16>, vector<512x256xbf16>, vector<128x256xf32> -> vector<128x256xf32>
    %c0_9 = arith.constant 0 : index
    %c512 = arith.constant 512 : index
    %12 = vector.load %arg8[%c0_9, %c512] : memref<1x1280xf32, #tpu.memory_space<vmem>>, vector<1x256xf32>
    %13 = vector.broadcast %12 : vector<1x256xf32> to vector<128x256xf32>
    %14 = arith.addf %11, %13 : vector<128x256xf32>
    %cst_10 = arith.constant 0.000000e+00 : f32
    %15 = vector.broadcast %cst_10 : f32 to vector<128x256xf32>
    %16 = arith.maximumf %14, %15 : vector<128x256xf32>
    %17 = arith.truncf %16 : vector<128x256xf32> to vector<128x256xbf16>
    %c0_11 = arith.constant 0 : index
    %c0_12 = arith.constant 0 : index
    %18 = vector.load %arg4[%c0_11, %c0_12] : memref<256x128xbf16, #tpu.memory_space<vmem>>, vector<256x128xbf16>
    %cst_13 = arith.constant dense<0.000000e+00> : vector<128x128xf32>
    %19 = tpu.matmul %17, %18, %cst_13 {dimension_numbers = #tpu.dot_dimension_numbers<[1], [0], [0], [1], [0, 0, 1, 1], [], []>} : vector<128x256xbf16>, vector<256x128xbf16>, vector<128x128xf32> -> vector<128x128xf32>
    %c0_14 = arith.constant 0 : index
    %c768 = arith.constant 768 : index
    %20 = vector.load %arg8[%c0_14, %c768] : memref<1x1280xf32, #tpu.memory_space<vmem>>, vector<1x128xf32>
    %21 = vector.broadcast %20 : vector<1x128xf32> to vector<128x128xf32>
    %22 = arith.addf %19, %21 : vector<128x128xf32>
    %cst_15 = arith.constant 0.000000e+00 : f32
    %23 = vector.broadcast %cst_15 : f32 to vector<128x128xf32>
    %24 = arith.maximumf %22, %23 : vector<128x128xf32>
    %25 = arith.truncf %24 : vector<128x128xf32> to vector<128x128xbf16>
    %c0_16 = arith.constant 0 : index
    %c0_17 = arith.constant 0 : index
    %26 = vector.load %arg5[%c0_16, %c0_17] : memref<128x128xbf16, #tpu.memory_space<vmem>>, vector<128x128xbf16>
    %cst_18 = arith.constant dense<0.000000e+00> : vector<128x128xf32>
    %27 = tpu.matmul %25, %26, %cst_18 {dimension_numbers = #tpu.dot_dimension_numbers<[1], [0], [0], [1], [0, 0, 1, 1], [], []>} : vector<128x128xbf16>, vector<128x128xbf16>, vector<128x128xf32> -> vector<128x128xf32>
    %c0_19 = arith.constant 0 : index
    %c896 = arith.constant 896 : index
    %28 = vector.load %arg8[%c0_19, %c896] : memref<1x1280xf32, #tpu.memory_space<vmem>>, vector<1x128xf32>
    %29 = vector.broadcast %28 : vector<1x128xf32> to vector<128x128xf32>
    %30 = arith.addf %27, %29 : vector<128x128xf32>
    %cst_20 = arith.constant 0.000000e+00 : f32
    %31 = vector.broadcast %cst_20 : f32 to vector<128x128xf32>
    %32 = arith.maximumf %30, %31 : vector<128x128xf32>
    %33 = arith.truncf %32 : vector<128x128xf32> to vector<128x128xbf16>
    %c0_21 = arith.constant 0 : index
    %c0_22 = arith.constant 0 : index
    %34 = vector.load %arg6[%c0_21, %c0_22] : memref<128x128xbf16, #tpu.memory_space<vmem>>, vector<128x128xbf16>
    %cst_23 = arith.constant dense<0.000000e+00> : vector<128x128xf32>
    %35 = tpu.matmul %33, %34, %cst_23 {dimension_numbers = #tpu.dot_dimension_numbers<[1], [0], [0], [1], [0, 0, 1, 1], [], []>} : vector<128x128xbf16>, vector<128x128xbf16>, vector<128x128xf32> -> vector<128x128xf32>
    %c0_24 = arith.constant 0 : index
    %c1024 = arith.constant 1024 : index
    %36 = vector.load %arg8[%c0_24, %c1024] : memref<1x1280xf32, #tpu.memory_space<vmem>>, vector<1x128xf32>
    %37 = vector.broadcast %36 : vector<1x128xf32> to vector<128x128xf32>
    %38 = arith.addf %35, %37 : vector<128x128xf32>
    %cst_25 = arith.constant 0.000000e+00 : f32
    %39 = vector.broadcast %cst_25 : f32 to vector<128x128xf32>
    %40 = arith.maximumf %38, %39 : vector<128x128xf32>
    %41 = arith.truncf %40 : vector<128x128xf32> to vector<128x128xbf16>
    %c0_26 = arith.constant 0 : index
    %c0_27 = arith.constant 0 : index
    %42 = vector.load %arg7[%c0_26, %c0_27] : memref<128x128xbf16, #tpu.memory_space<vmem>>, vector<128x128xbf16>
    %cst_28 = arith.constant dense<0.000000e+00> : vector<128x128xf32>
    %43 = tpu.matmul %41, %42, %cst_28 {dimension_numbers = #tpu.dot_dimension_numbers<[1], [0], [0], [1], [0, 0, 1, 1], [], []>} : vector<128x128xbf16>, vector<128x128xbf16>, vector<128x128xf32> -> vector<128x128xf32>
    %c0_29 = arith.constant 0 : index
    %c1152 = arith.constant 1152 : index
    %44 = vector.load %arg8[%c0_29, %c1152] : memref<1x1280xf32, #tpu.memory_space<vmem>>, vector<1x128xf32>
    %45 = vector.broadcast %44 : vector<1x128xf32> to vector<128x128xf32>
    %46 = arith.addf %43, %45 : vector<128x128xf32>
    %c0_30 = arith.constant 0 : index
    %c0_31 = arith.constant 0 : index
    %47 = vector.load %arg9[%c0_30, %c0_31] : memref<128x128xf32, #tpu.memory_space<vmem>>, vector<128x128xf32>
    tpu.vector_store %arg9[%c0_30, %c0_31], %46 {strides = array<i32>} : memref<128x128xf32, #tpu.memory_space<vmem>>, vector<128x128xf32>,
    return
  }
  func.func @transform_0(%arg0: i32) -> (i32, i32) {
    %c0_i32 = arith.constant 0 : i32
    %c0_i32_0 = arith.constant 0 : i32
    return %arg0, %c0_i32 : i32, i32
  }
  func.func @transform_1(%arg0: i32) -> (i32, i32) {
    %c0_i32 = arith.constant 0 : i32
    %c0_i32_0 = arith.constant 0 : i32
    %c0_i32_1 = arith.constant 0 : i32
    return %c0_i32, %c0_i32_0 : i32, i32
  }
  func.func @transform_2(%arg0: i32) -> (i32, i32) {
    %c0_i32 = arith.constant 0 : i32
    %c0_i32_0 = arith.constant 0 : i32
    %c0_i32_1 = arith.constant 0 : i32
    return %c0_i32, %c0_i32_0 : i32, i32
  }
  func.func @transform_3(%arg0: i32) -> (i32, i32) {
    %c0_i32 = arith.constant 0 : i32
    %c0_i32_0 = arith.constant 0 : i32
    %c0_i32_1 = arith.constant 0 : i32
    return %c0_i32, %c0_i32_0 : i32, i32
  }
  func.func @transform_4(%arg0: i32) -> (i32, i32) {
    %c0_i32 = arith.constant 0 : i32
    %c0_i32_0 = arith.constant 0 : i32
    %c0_i32_1 = arith.constant 0 : i32
    return %c0_i32, %c0_i32_0 : i32, i32
  }
  func.func @transform_5(%arg0: i32) -> (i32, i32) {
    %c0_i32 = arith.constant 0 : i32
    %c0_i32_0 = arith.constant 0 : i32
    %c0_i32_1 = arith.constant 0 : i32
    return %c0_i32, %c0_i32_0 : i32, i32
  }
  func.func @transform_6(%arg0: i32) -> (i32, i32) {
    %c0_i32 = arith.constant 0 : i32
    %c0_i32_0 = arith.constant 0 : i32
    %c0_i32_1 = arith.constant 0 : i32
    return %c0_i32, %c0_i32_0 : i32, i32
  }
  func.func @transform_7(%arg0: i32) -> (i32, i32) {
    %c0_i32 = arith.constant 0 : i32
    %c0_i32_0 = arith.constant 0 : i32
    %c0_i32_1 = arith.constant 0 : i32
    return %c0_i32, %c0_i32_0 : i32, i32
  }
  func.func @transform_8(%arg0: i32) -> (i32, i32) {
    %c0_i32 = arith.constant 0 : i32
    %c0_i32_0 = arith.constant 0 : i32
    return %arg0, %c0_i32 : i32, i32
  }
}

</mosaic_0001>

<bundles_post_ra>
// kernel: tpu_custom_call.1
= control target key start
LH: loop header
LB: loop body
LE: loop exit
PB: predicated region body
PF: predicated region fallthrough
CT: control target
= control target key end

     0   :  { %s4117_s0 = inlined_call_operand.hbm [shape: f32[384,128], index: 0, kind: input, shape index: {}]   ;;  %s4118_s1 = inlined_call_operand.hbm [shape: bf16[128,512], index: 1, kind: input, shape index: {}]   ;;  %s4119_s2 = inlined_call_operand.hbm [shape: bf16[512,256], index: 2, kind: input, shape index: {}]   ;;  %s4120_s3 = inlined_call_operand.hbm [shape: bf16[256,128], index: 3, kind: input, shape index: {}]   ;;  %s4121_s4 = inlined_call_operand.hbm [shape: bf16[128,128], index: 4, kind: input, shape index: {}]   ;;  %s4122_s5 = inlined_call_operand.hbm [shape: bf16[128,128], index: 5, kind: input, shape index: {}]   ;;  %s4123_s6 = inlined_call_operand.hbm [shape: bf16[128,128], index: 6, kind: input, shape index: {}]   ;;  %s4124_s7 = inlined_call_operand.vmem [shape: f32[1,1280], index: 7, kind: input, shape index: {}]   ;;  %s4125_s8 = inlined_call_operand.hbm [shape: f32[384,128], index: 8, kind: output, shape index: {}]  }
   0x1   :  { %4132 = sst [smem:[#allocation20_spill]] %s4118_s1 }
   0x2   :  { %4133 = sst [smem:[#allocation21_spill]] %s4119_s2 }
   0x3   :  { %13 = vsyncpa [#allocation3], 0 }
   0x4   :  { %15 = vsyncpa [#allocation3 + $0x1], 0 }
   0x5   :  { %16 = vsyncpa [#allocation6], 0 }
   0x6   :  { %17 = vsyncpa [#allocation9], 0 }
   0x7   :  { %18 = vsyncpa [#allocation12], 0 }
   0x8   :  { %19 = vsyncpa [#allocation4], 0 }
   0x9   :  { %21 = vsyncpa [#allocation4 + $0x1], 0  ;;  %s3628_s27 = smov 0   ;;  %s3630_s28 = smov 0  }
   0xa   :  { %s3632_s29 = smov 0   ;;  %s3634_s30 = smov 0  }
   0xb LB: > { %s3566_s9 = smov [#allocation5]   ;;  %s3649_s11 = sadd.s32 4294967295, %s3564_s30   ;;  %s3564_s30 = sphi %s3634_s30, %s4159_s30   ;;  %s3560_s29 = sphi %s3632_s29, %s4158_s29   ;;  %s3556_s28 = sphi %s3630_s28, %s4157_s28   ;;  %s3552_s27 = sphi %s3628_s27, %s4156_s27  }
   0xc   : > { %s243_s10 = sshll.u32 %s3566_s9, 4  ;;  %p2613_p0 = scmp.ge.s32.totalorder %s3564_s30, 1  ;;  %s244_s10 = int_to_ptr.vmem [resolvable:$true] %s243_s10 }
   0xd   : > { %p4128_p1 = scmp.eq.s32.totalorder %s3649_s11, 0  ;;  %p231_p2 = scmp.lt.s32.totalorder %s3564_s30, 4 }
   0xe   : > { %s3567_s13 = smov [#allocation8]   ;;  %s3568_s16 = smov [#allocation11]  }
   0xf   : > { %p3654_p3 = pnand %p2613_p0, %p231_p2  ;;  %s269_s14 = sshll.u32 %s3567_s13, 4  ;;  %s3666_s14 = int_to_ptr.vmem [resolvable:$true] %s269_s14 }
  0x10   : > { %s3668_s17 = sshll.u32 %s3568_s16, 4  ;;  %s3315_s19 = scalar_lea.vmem %s244_s10, 4096  ;;  %s296_s17 = int_to_ptr.vmem [resolvable:$true] %s3668_s17 }
  0x11   : > { %s4134_s12 = scalar_select %p3654_p3, 1, 0 }
  0x12   : > { %p3032_p4 = pneg %p3654_p3  ;;  %p3316_p7 = scmp.ne.s32.totalorder %s244_s10, %s3315_s19 }
  0x13   : > { %p3323_p10 = scmp.lt.s32.totalorder %s244_s10, %s244_s10  ;;  %p3324_p11 = scmp.lt.s32.totalorder %s3315_s19, %s3315_s19 }
  0x14   : > { %p3662_p5 = pnand %p3032_p4, %p4128_p1 }
  0x15   : > { %p3325_p12 = por %p3324_p11, %p3323_p10 }
  0x16   : > { %p3672_p6 = pneg %p3662_p5 }
  0x18   : > { %p3318_p8 = pnand %p3316_p7, %p3672_p6 }
  0x1a   : > { %p3319_p9 = pneg %p3318_p8 }
  0x1c   : > { %p3326_p13 = pnand %p3325_p12, %p3319_p9 }
  0x1e   : > { %3329 = shalt.err (!%p3326_p13)
}
  0x1f   : > { %s3569_s20 = smov 256   ;;  %s3570_s21 = smov 16  }
  0x20   : > { %s4137_s1 = sld [smem:[#allocation20_spill]]  ;;  %s3341_s24 = scalar_lea.vmem %s3666_s14, 2048 }
  0x21   : > { %p3342_p0 = scmp.ne.s32.totalorder %s3666_s14, %s3341_s24  ;;  %p3349_p7 = scmp.lt.s32.totalorder %s3666_s14, %s3666_s14 }
  0x22   : > { %p3350_p8 = scmp.lt.s32.totalorder %s3341_s24, %s3341_s24 }
  0x23   : > { %p3344_p2 = pnand %p3342_p0, %p3672_p6 }
  0x24   : > { %p3351_p9 = por %p3350_p8, %p3349_p7 }
  0x25   : > { %p3345_p4 = pneg %p3344_p2 }
  0x26   : > { %3035 = dma.hbm_to_vmem [thread:$0]  (!%p3662_p5), %s4137_s1, 4096, %s244_s10, [#allocation6], %s3569_s20, %s3569_s20, %s3570_s21  }
  0x27   : > { %p3352_p10 = pnand %p3351_p9, %p3345_p4 }
  0x29   : > { %3355 = shalt.err (!%p3352_p10)
}
  0x2a   : > { %s3571_s25 = smov 64   ;;  %s3572_s26 = smov 4  }
  0x2b   : > { %3041 = dma.hbm_to_vmem [thread:$0]  (!%p3662_p5), %s4120_s3, 2048, %s3666_s14, [#allocation9], %s3571_s25, %s3571_s25, %s3572_s26  }
  0x2c   : > { %s3367_s13 = scalar_lea.vmem %s296_s17, 1024  ;;  %p3375_p0 = scmp.lt.s32.totalorder %s296_s17, %s296_s17 }
  0x2d   : > { %p3368_p11 = scmp.ne.s32.totalorder %s296_s17, %s3367_s13  ;;  %p3376_p2 = scmp.lt.s32.totalorder %s3367_s13, %s3367_s13 }
  0x2f   : > { %p3370_p12 = pnand %p3368_p11, %p3672_p6  ;;  %p3377_p4 = por %p3376_p2, %p3375_p0 }
  0x31   : > { %p3371_p13 = pneg %p3370_p12 }
  0x33   : > { %p3378_p7 = pnand %p3377_p4, %p3371_p13 }
  0x35   : > { %3381 = shalt.err (!%p3378_p7)
}
  0x36   : > { %3047 = dma.hbm_to_vmem [thread:$0]  (!%p3662_p5), %s4122_s5, 1024, %s296_s17, [#allocation12], %s3571_s25, %s3571_s25, %s3572_s26  }
  0x37   : > { %s3573_s14 = smov [#allocation7]  }
  0x38   : > { %s256_s20 = sshll.u32 %s3573_s14, 4  ;;  %s257_s20 = int_to_ptr.vmem [resolvable:$true] %s256_s20 }
  0x39   : > { %s3393_s21 = scalar_lea.vmem %s257_s20, 8192  ;;  %p3401_p11 = scmp.lt.s32.totalorder %s257_s20, %s257_s20 }
  0x3a   : > { %p3394_p8 = scmp.ne.s32.totalorder %s257_s20, %s3393_s21  ;;  %p3402_p12 = scmp.lt.s32.totalorder %s3393_s21, %s3393_s21 }
  0x3c   : > { %p3396_p9 = pnand %p3394_p8, %p3672_p6  ;;  %p3403_p13 = por %p3402_p12, %p3401_p11 }
  0x3e   : > { %p3397_p10 = pneg %p3396_p9 }
  0x40   : > { %p3404_p0 = pnand %p3403_p13, %p3397_p10 }
  0x42   : > { %3407 = shalt.err (!%p3404_p0)
}
  0x43   : > { %s4126_s22 = smov 128   ;;  %s4127_s23 = smov 8  }
  0x44   : > { %s4138_s2 = sld [smem:[#allocation21_spill]]  ;;  %s3576_s9 = smov [#allocation10]  }
  0x45   : > { %s282_s10 = sshll.u32 %s3576_s9, 4  ;;  %s3577_s13 = smov [#allocation13]   ;;  %s283_s10 = int_to_ptr.vmem [resolvable:$true] %s282_s10 }
  0x46   : > { %s308_s16 = sshll.u32 %s3577_s13, 4  ;;  %s3419_s19 = scalar_lea.vmem %s283_s10, 1024  ;;  %s309_s16 = int_to_ptr.vmem [resolvable:$true] %s308_s16 }
  0x47   : > { %p3420_p2 = scmp.ne.s32.totalorder %s283_s10, %s3419_s19  ;;  %p3427_p8 = scmp.lt.s32.totalorder %s283_s10, %s283_s10 }
  0x48   : > { %p3428_p9 = scmp.lt.s32.totalorder %s3419_s19, %s3419_s19 }
  0x49   : > { %p3422_p4 = pnand %p3420_p2, %p3672_p6 }
  0x4a   : > { %3038 = dma.hbm_to_vmem [thread:$0]  (!%p3662_p5), %s4138_s2, 8192, %s257_s20, [#allocation6], %s4126_s22, %s4126_s22, %s4127_s23  }
  0x4b   : > { %p3423_p7 = pneg %p3422_p4  ;;  %p3429_p10 = por %p3428_p9, %p3427_p8 }
  0x4d   : > { %p3430_p11 = pnand %p3429_p10, %p3423_p7 }
  0x4f   : > { %3433 = shalt.err (!%p3430_p11)
}
  0x50   : > { %3044 = dma.hbm_to_vmem [thread:$0]  (!%p3662_p5), %s4121_s4, 1024, %s283_s10, [#allocation9], %s3571_s25, %s3571_s25, %s3572_s26  }
  0x51   : > { %s3445_s21 = scalar_lea.vmem %s309_s16, 1024  ;;  %p3453_p2 = scmp.lt.s32.totalorder %s309_s16, %s309_s16 }
  0x52   : > { %p3446_p12 = scmp.ne.s32.totalorder %s309_s16, %s3445_s21  ;;  %p3454_p4 = scmp.lt.s32.totalorder %s3445_s21, %s3445_s21 }
  0x54   : > { %p3448_p13 = pnand %p3446_p12, %p3672_p6  ;;  %p3455_p8 = por %p3454_p4, %p3453_p2 }
  0x56   : > { %p3449_p0 = pneg %p3448_p13 }
  0x58   : > { %p3456_p7 = pnand %p3455_p8, %p3449_p0 }
  0x5a   : > { %3459 = shalt.err (!%p3456_p7)
}
  0x5b   : > { %3050 = dma.hbm_to_vmem [thread:$0]  (!%p3662_p5), %s4123_s6, 1024, %s309_s16, [#allocation12], %s3571_s25, %s3571_s25, %s3572_s26  }
  0x5c   : > { %s2612_s15 = sadd.s32 4294967294, %s3564_s30   ;;  %s3741_s18 = sadd.s32 1, %s3564_s30  }
  0x5d   : > { %s31_s9 = ssub.s32 %s3564_s30, %s3741_s18  ;;  %s34_s10 = sadd.s32 1, %s3560_s29 }
  0x5e   : > { %p32_p6 = scmp.eq.s32.totalorder %s31_s9, 0  ;;  %p41_p9 = scmp.ne.s32.totalorder %s3560_s29, %s3556_s28 }
  0x5f   : > { %p42_p10 = scmp.eq.s32.totalorder %s3564_s30, 0  ;;  %p47_p11 = scmp.ne.s32.totalorder %s3556_s28, %s3552_s27 }
  0x60   : > { %s3752_s13 = scalar_select %p32_p6, %s3560_s29, %s34_s10  }
  0x61   : > { %p3754_p12 = por %p42_p10, %p41_p9  ;;  %p3760_p5 = por %p4128_p1, %p47_p11 }
  0x62   : > { %p218_p13 = scmp.eq.s32.totalorder %s3649_s11, 2  ;;  %p224_p0 = scmp.eq.s32.totalorder %s2612_s15, 2 }
  0x63   : > { %s4140_s25 = scalar_select %p3760_p5, 1, 0 }
  0x64   : > { %p3065_p2 = scmp.lt.s32.totalorder %s3564_s30, 3  ;;  %s325_s26 = sand.u32 1, %s3560_s29  }
  0x65   : > { %p3767_p4 = por %p218_p13, %p41_p9  ;;  %p3771_p8 = por %p224_p0, %p47_p11 }
  0x66   : > { %s2621_s20 = sshll.u32 %s325_s26, 7  ;;  %s2778_s21 = sshll.u32 %s3564_s30, 11 }
  0x67   : > { %s4141_s16 = scalar_select %p3767_p4, 1, 0 }
  0x68   : > { %s4142_s14 = scalar_select %p3771_p8, 1, 0 }
  0x69   : > { %s3779_s9 = scalar_lea.hbm %s4117_s0, %s2778_s21  ;;  %s329_s15 = scalar_lea.vmem [#allocation2], %s2621_s20 }
  0x6a   : > { %s336_s10 = sshll.u32 %s329_s15, 4  ;;  %p3785_p7 = pnand %p3065_p2, %p3754_p12  ;;  %s3781_s10 = int_to_ptr.vmem [resolvable:$true] %s336_s10 }
  0x6b   : > { %s3789_s23 = scalar_lea.sflag [#allocation3], %s325_s26  ;;  %s3460_s1 = scalar_lea.hbm %s3779_s9, 2048 }
  0x6c   : > { %p3461_p6 = scmp.ne.s32.totalorder %s3779_s9, %s3460_s1  ;;  %p3462_p9 = pneg %p3785_p7 }
  0x6d   : > { %s3465_s20 = scalar_lea.hbm %s4117_s0, 6144  ;;  %p3466_p12 = scmp.lt.s32.totalorder %s3779_s9, %s4117_s0 }
  0x6e   : > { %p3463_p10 = pnand %p3462_p9, %p3461_p6  ;;  %p3467_p13 = scmp.lt.s32.totalorder %s3465_s20, %s3460_s1 }
  0x70   : > { %p3464_p11 = pneg %p3463_p10  ;;  %p3468_p0 = por %p3467_p13, %p3466_p12 }
  0x72   : > { %p3469_p2 = pnand %p3468_p0, %p3464_p11 }
  0x74   : > { %3472 = shalt.err (!%p3469_p2)
}
  0x75   : > { %s3473_s19 = scalar_lea.vmem %s3781_s10, 2048  ;;  %s3578_s26 = smov [#allocation2]  }
  0x76   : > { %p3474_p1 = scmp.ne.s32.totalorder %s3781_s10, %s3473_s19  ;;  %s3478_s2 = sshll.u32 %s3578_s26, 4  ;;  %s3479_s2 = int_to_ptr.vmem [resolvable:$false] %s3478_s2 }
  0x77   : > { %s3480_s21 = scalar_lea.vmem %s3479_s2, 4096  ;;  %p3481_p10 = scmp.lt.s32.totalorder %s3781_s10, %s3479_s2 }
  0x78   : > { %p3476_p8 = pnand %p3474_p1, %p3462_p9  ;;  %p3482_p4 = scmp.lt.s32.totalorder %s3480_s21, %s3473_s19 }
  0x7a   : > { %p3477_p6 = pneg %p3476_p8  ;;  %p3483_p5 = por %p3482_p4, %p3481_p10 }
  0x7c   : > { %p3484_p3 = pnand %p3483_p5, %p3477_p6 }
  0x7e   : > { %3487 = shalt.err (!%p3484_p3)
}
  0x7f   : > { %s4144_s1 = smov 8   ;;  %s4145_s17 = smov 128  }
  0x80   : > { %3054 = dma.hbm_to_vmem [thread:$0]  (!%p3785_p7), %s3779_s9, 2048, %s3781_s10, %s3789_s23, %s4145_s17, %s4145_s17, %s4144_s1  }
  0x81   : > { %p4146_p1 = scmp.ne.s32.totalorder %s4134_s12, 0 }
  0x82   : > { %s3816_s20 = sand.u32 (!%p4146_p1), 1, %s3556_s28   ;;  %p4147_p3 = scmp.ne.s32.totalorder (!%p4146_p1), %s4140_s25, 0 }
  0x83   : > { %348 = sbr.rel (%p4146_p1) target bundleno = 1485 (0x5cd), region = 52  ;;  %s2625_s2 = sshll.u32 (!%p4146_p1), %s3816_s20, 7 }
  0x84   : > { %s351_s24 = scalar_lea.sflag (!%p4146_p1), [#allocation3], %s3816_s20  ;;  %s3822_s22 = scalar_lea.vmem (!%p4146_p1), [#allocation2], %s2625_s2 }
  0x88   : > { %3531 = dma.done.wait (%p4147_p3), %s351_s24, 2048  }
  0x89   : > { %3533 = vsyncadd (%p4147_p3), %s351_s24, 4294965248  ;;  %p4148_p5 = scmp.eq.s32.totalorder %s3649_s11, 0 }
  0x8b   : > { %3535 = dma.done.wait (%p4148_p5), [#allocation6], 12288   ;;  %p4149_p4 = pmov %p4148_p5 }
  0x8d   : > { %3537 = vsyncadd (%p4149_p4), [#allocation6], 4294955008  ;;  %p4150_p8 = pmov %p4149_p4 }
  0x8e   : > { %p4151_p7 = pmov %p4149_p4 }
  0x8f   : > { %3539 = dma.done.wait (%p4150_p8), [#allocation9], 3072  }
  0x90   : > { %3541 = vsyncadd (%p4151_p7), [#allocation9], 4294964224  ;;  %p4152_p9 = pmov %p4149_p4 }
  0x91   : > { %p4153_p11 = pmov %p4149_p4 }
  0x92   : > { %3543 = dma.done.wait (%p4152_p9), [#allocation12], 2048  }
  0x93   : > { %3545 = vsyncadd (%p4153_p11), [#allocation12], 4294965248  ;;  %v3579_v0 = vmov 0   ;;  %v3120_v1 = vld [vmem:[#allocation5 + $0xe4] ss:$16 sps:$4 sm:$0xff]   ;;  %v415_v34 = vld [vmem:[%s3822_s22 + $0x8] sm:$0xff] }
  0x94   : > { %684 = vmatprep.mubr.bf16.mxu0 %v3579_v0  ;;  %797 = vmatprep.mubr.bf16.mxu1 %v3579_v0  ;;  %v3122_v2 = vld [vmem:[#allocation5 + $0xec] ss:$16 sps:$4 sm:$0xff]   ;;  %v3124_v3 = vld [vmem:[#allocation5 + $0xe0] ss:$16 sps:$4 sm:$0xff]   ;;  %v3125_v4 = vld [vmem:[#allocation5 + $0xe8] ss:$16 sps:$4 sm:$0xff]  }
  0x95   : > { %652 = vmatprep.subr.bf16.mxu0 %v3120_v1  ;;  %765 = vmatprep.subr.bf16.mxu1 %v3122_v2  ;;  %v3126_v5 = vld [vmem:[#allocation5 + $0xc4] ss:$16 sps:$4 sm:$0xff]   ;;  %v3128_v6 = vld [vmem:[#allocation5 + $0xcc] ss:$16 sps:$4 sm:$0xff]   ;;  %v3130_v7 = vld [vmem:[#allocation5 + $0xc0] ss:$16 sps:$4 sm:$0xff]  }
  0x96   : > { %653 = vmatpush1.bf16.msra.mxu0 %v3124_v3  ;;  %766 = vmatpush1.bf16.msra.mxu1 %v3125_v4  ;;  %v3131_v8 = vld [vmem:[#allocation5 + $0xc8] ss:$16 sps:$4 sm:$0xff]   ;;  %v3132_v9 = vld [vmem:[#allocation5 + $0xa4] ss:$16 sps:$4 sm:$0xff]   ;;  %v3134_v10 = vld [vmem:[#allocation5 + $0xac] ss:$16 sps:$4 sm:$0xff]  }
  0x97   : > { %654 = vmatprep.subr.bf16.mxu0 %v3126_v5  ;;  %767 = vmatprep.subr.bf16.mxu1 %v3128_v6  ;;  %v3136_v11 = vld [vmem:[#allocation5 + $0xa0] ss:$16 sps:$4 sm:$0xff]   ;;  %v3137_v12 = vld [vmem:[#allocation5 + $0xa8] ss:$16 sps:$4 sm:$0xff]   ;;  %v3138_v13 = vld [vmem:[#allocation5 + $0x84] ss:$16 sps:$4 sm:$0xff]  }
  0x98   : > { %v3140_v14 = vld [vmem:[#allocation5 + $0x8c] ss:$16 sps:$4 sm:$0xff]   ;;  %v3142_v15 = vld [vmem:[#allocation5 + $0x80] ss:$16 sps:$4 sm:$0xff]   ;;  %v3143_v16 = vld [vmem:[#allocation5 + $0x88] ss:$16 sps:$4 sm:$0xff]  }
  0x99   : > { %v3144_v17 = vld [vmem:[#allocation5 + $0x64] ss:$16 sps:$4 sm:$0xff]   ;;  %v3146_v18 = vld [vmem:[#allocation5 + $0x6c] ss:$16 sps:$4 sm:$0xff]   ;;  %v3148_v19 = vld [vmem:[#allocation5 + $0x60] ss:$16 sps:$4 sm:$0xff]  }
  0x9a   : > { %655 = vmatpush1.bf16.msra.mxu0 %v3130_v7  ;;  %768 = vmatpush1.bf16.msra.mxu1 %v3131_v8  ;;  %v3149_v20 = vld [vmem:[#allocation5 + $0x68] ss:$16 sps:$4 sm:$0xff]   ;;  %v3150_v21 = vld [vmem:[#allocation5 + $0x44] ss:$16 sps:$4 sm:$0xff]   ;;  %v3152_v22 = vld [vmem:[#allocation5 + $0x4c] ss:$16 sps:$4 sm:$0xff]  }
  0x9b   : > { %656 = vmatprep.subr.bf16.mxu0 %v3132_v9  ;;  %769 = vmatprep.subr.bf16.mxu1 %v3134_v10  ;;  %v3154_v23 = vld [vmem:[#allocation5 + $0x40] ss:$16 sps:$4 sm:$0xff]   ;;  %v3155_v24 = vld [vmem:[#allocation5 + $0x48] ss:$16 sps:$4 sm:$0xff]   ;;  %v3156_v25 = vld [vmem:[#allocation5 + $0x24] ss:$16 sps:$4 sm:$0xff]  }
  0x9c   : > { %v3158_v26 = vld [vmem:[#allocation5 + $0x2c] ss:$16 sps:$4 sm:$0xff]   ;;  %v3160_v27 = vld [vmem:[#allocation5 + $0x20] ss:$16 sps:$4 sm:$0xff]   ;;  %v3161_v28 = vld [vmem:[#allocation5 + $0x28] ss:$16 sps:$4 sm:$0xff]  }
  0x9d   : > { %v3162_v29 = vld [vmem:[#allocation5 + $0x4] ss:$16 sps:$4 sm:$0xff]   ;;  %v3164_v30 = vld [vmem:[#allocation5 + $0xc] ss:$16 sps:$4 sm:$0xff]   ;;  %v3166_v31 = vld [vmem:[#allocation5] ss:$16 sps:$4 sm:$0xff]  }
  0x9e   : > { %657 = vmatpush1.bf16.msra.mxu0 %v3136_v11  ;;  %770 = vmatpush1.bf16.msra.mxu1 %v3137_v12  ;;  %v3167_v32 = vld [vmem:[#allocation5 + $0x8] ss:$16 sps:$4 sm:$0xff]   ;;  %v414_v33 = vld [vmem:[%s3822_s22] sm:$0xff]  ;;  %v3170_v35 = vld [vmem:[#allocation7 + $0x74] ss:$8 sps:$4 sm:$0xff]   ;;  %s2469_s10 = scalar_lea.sflag [#allocation4], %s3816_s20 }
  0x9f   : > { %658 = vmatprep.subr.bf16.mxu0 %v3138_v13  ;;  %771 = vmatprep.subr.bf16.mxu1 %v3140_v14  ;;  %v3173_v36 = vld [vmem:[#allocation7 + $0x174] ss:$8 sps:$4 sm:$0xff]   ;;  %v430_v37 = vpack.c.bf16 %v415_v34, %v414_v33  ;;  %v3168_v38 = vld [vmem:[#allocation7 + $0x70] ss:$8 sps:$4 sm:$0xff]   ;;  %v3176_v40 = vld [vmem:[#allocation7 + $0x64] ss:$8 sps:$4 sm:$0xff]  }
  0xa0   : > { %v3171_v39 = vld [vmem:[#allocation7 + $0x170] ss:$8 sps:$4 sm:$0xff]   ;;  %v3179_v41 = vld [vmem:[#allocation7 + $0x164] ss:$8 sps:$4 sm:$0xff]   ;;  %v3174_v44 = vld [vmem:[#allocation7 + $0x60] ss:$8 sps:$4 sm:$0xff]  }
  0xa1   : > { %v416_v42 = vld [vmem:[%s3822_s22 + $0x10] sm:$0xff]  ;;  %v417_v43 = vld [vmem:[%s3822_s22 + $0x18] sm:$0xff]  ;;  %v3177_v45 = vld [vmem:[#allocation7 + $0x160] ss:$8 sps:$4 sm:$0xff]   ;;  %p4154_p13 = scmp.ne.s32.totalorder %s4141_s16, 0  ;;  %s3580_s15 = smov [#allocation14]  }
  0xa2   : > { %659 = vmatpush1.bf16.msra.mxu0 %v3142_v15  ;;  %772 = vmatpush1.bf16.msra.mxu1 %v3143_v16  ;;  %v3182_v46 = vld [vmem:[#allocation7 + $0x54] ss:$8 sps:$4 sm:$0xff]   ;;  %v431_v48 = vpack.c.bf16 %v417_v43, %v416_v42  ;;  %v3180_v49 = vld [vmem:[#allocation7 + $0x50] ss:$8 sps:$4 sm:$0xff]   ;;  %v3188_v51 = vld [vmem:[#allocation7 + $0x44] ss:$8 sps:$4 sm:$0xff]  }
  0xa3   : > { %660 = vmatprep.subr.bf16.mxu0 %v3144_v17  ;;  %773 = vmatprep.subr.bf16.mxu1 %v3146_v18  ;;  %v3185_v47 = vld [vmem:[#allocation7 + $0x154] ss:$8 sps:$4 sm:$0xff]   ;;  %v3183_v50 = vld [vmem:[#allocation7 + $0x150] ss:$8 sps:$4 sm:$0xff]   ;;  %v3191_v52 = vld [vmem:[#allocation7 + $0x144] ss:$8 sps:$4 sm:$0xff]  }
  0xa4   : > { %v418_v53 = vld [vmem:[%s3822_s22 + $0x20] sm:$0xff]  ;;  %v419_v54 = vld [vmem:[%s3822_s22 + $0x28] sm:$0xff]  ;;  %v3194_v57 = vld [vmem:[#allocation7 + $0x34] ss:$8 sps:$4 sm:$0xff]   ;;  %s3492_s19 = sshll.u32 %s3580_s15, 4  ;;  %s3493_s19 = int_to_ptr.vmem [resolvable:$false] %s3492_s19 }
  0xa5   : > { %v3186_v55 = vld [vmem:[#allocation7 + $0x40] ss:$8 sps:$4 sm:$0xff]   ;;  %v3197_v58 = vld [vmem:[#allocation7 + $0x134] ss:$8 sps:$4 sm:$0xff]   ;;  %v432_v59 = vpack.c.bf16 %v419_v54, %v418_v53  ;;  %v3192_v60 = vld [vmem:[#allocation7 + $0x30] ss:$8 sps:$4 sm:$0xff]  }
  0xa6   : > { %661 = vmatpush1.bf16.msra.mxu0 %v3148_v19  ;;  %774 = vmatpush1.bf16.msra.mxu1 %v3149_v20  ;;  %v3189_v56 = vld [vmem:[#allocation7 + $0x140] ss:$8 sps:$4 sm:$0xff]   ;;  %v3195_v61 = vld [vmem:[#allocation7 + $0x130] ss:$8 sps:$4 sm:$0xff]   ;;  %v3200_v62 = vld [vmem:[#allocation7 + $0x24] ss:$8 sps:$4 sm:$0xff]  }
  0xa7   : > { %662 = vmatprep.subr.bf16.mxu0 %v3150_v21  ;;  %775 = vmatprep.subr.bf16.mxu1 %v3152_v22  ;;  %v3203_v63 = vld [vmem:[#allocation7 + $0x124] ss:$8 sps:$4 sm:$0xff]   ;;  %v420_v1 = vld [vmem:[%s3822_s22 + $0x30] sm:$0xff]  ;;  %v421_v2 = vld [vmem:[%s3822_s22 + $0x38] sm:$0xff]  ;;  %s3494_s26 = scalar_lea.vmem %s3493_s19, 4096 }
  0xa8   : > { %v3198_v3 = vld [vmem:[#allocation7 + $0x20] ss:$8 sps:$4 sm:$0xff]   ;;  %v3206_v5 = vld [vmem:[#allocation7 + $0x14] ss:$8 sps:$4 sm:$0xff]   ;;  %v433_v7 = vpack.c.bf16 %v421_v2, %v420_v1  ;;  %v3204_v8 = vld [vmem:[#allocation7 + $0x10] ss:$8 sps:$4 sm:$0xff]  }
  0xa9   : > { %v3201_v4 = vld [vmem:[#allocation7 + $0x120] ss:$8 sps:$4 sm:$0xff]   ;;  %v3209_v6 = vld [vmem:[#allocation7 + $0x114] ss:$8 sps:$4 sm:$0xff]   ;;  %v3207_v9 = vld [vmem:[#allocation7 + $0x110] ss:$8 sps:$4 sm:$0xff]  }
  0xaa   : > { %663 = vmatpush1.bf16.msra.mxu0 %v3154_v23  ;;  %776 = vmatpush1.bf16.msra.mxu1 %v3155_v24  ;;  %v422_v10 = vld [vmem:[%s3822_s22 + $0x40] sm:$0xff]  ;;  %v423_v13 = vld [vmem:[%s3822_s22 + $0x48] sm:$0xff]  ;;  %v3218_v16 = vld [vmem:[#allocation7 + $0xf4] ss:$8 sps:$4 sm:$0xff]  }
  0xab   : > { %664 = vmatprep.subr.bf16.mxu0 %v3156_v25  ;;  %777 = vmatprep.subr.bf16.mxu1 %v3158_v26  ;;  %v3212_v11 = vld [vmem:[#allocation7 + $0x4] ss:$8 sps:$4 sm:$0xff]   ;;  %v3210_v14 = vld [vmem:[#allocation7] ss:$8 sps:$4 sm:$0xff]   ;;  %v3221_v17 = vld [vmem:[#allocation7 + $0x1f4] ss:$8 sps:$4 sm:$0xff]   ;;  %v434_v18 = vpack.c.bf16 %v423_v13, %v422_v10 }
  0xac   : > { %v3215_v12 = vld [vmem:[#allocation7 + $0x104] ss:$8 sps:$4 sm:$0xff]   ;;  %v3213_v15 = vld [vmem:[#allocation7 + $0x100] ss:$8 sps:$4 sm:$0xff]   ;;  %v3216_v19 = vld [vmem:[#allocation7 + $0xf0] ss:$8 sps:$4 sm:$0xff]  }
  0xad   : > { %v3219_v20 = vld [vmem:[#allocation7 + $0x1f0] ss:$8 sps:$4 sm:$0xff]   ;;  %v3224_v21 = vld [vmem:[#allocation7 + $0xe4] ss:$8 sps:$4 sm:$0xff]   ;;  %v3222_v25 = vld [vmem:[#allocation7 + $0xe0] ss:$8 sps:$4 sm:$0xff]  }
  0xae   : > { %665 = vmatpush1.bf16.msra.mxu0 %v3160_v27  ;;  %778 = vmatpush1.bf16.msra.mxu1 %v3161_v28  ;;  %v3227_v22 = vld [vmem:[#allocation7 + $0x1e4] ss:$8 sps:$4 sm:$0xff]   ;;  %v424_v23 = vld [vmem:[%s3822_s22 + $0x50] sm:$0xff]  ;;  %v425_v24 = vld [vmem:[%s3822_s22 + $0x58] sm:$0xff] }
  0xaf   : > { %666 = vmatprep.subr.bf16.mxu0 %v3162_v29  ;;  %779 = vmatprep.subr.bf16.mxu1 %v3164_v30  ;;  %v3225_v26 = vld [vmem:[#allocation7 + $0x1e0] ss:$8 sps:$4 sm:$0xff]   ;;  %v3230_v27 = vld [vmem:[#allocation7 + $0xd4] ss:$8 sps:$4 sm:$0xff]   ;;  %v435_v29 = vpack.c.bf16 %v425_v24, %v424_v23  ;;  %v3228_v30 = vld [vmem:[#allocation7 + $0xd0] ss:$8 sps:$4 sm:$0xff]  }
  0xb0   : > { %v3233_v28 = vld [vmem:[#allocation7 + $0x1d4] ss:$8 sps:$4 sm:$0xff]   ;;  %v3239_v33 = vld [vmem:[#allocation7 + $0x1c4] ss:$8 sps:$4 sm:$0xff]   ;;  %v3243_v42 = vld [vmem:[#allocation7 + $0x1b0] ss:$8 sps:$4 sm:$0xff]  }
  0xb1   : > { %v426_v34 = vld [vmem:[%s3822_s22 + $0x60] sm:$0xff]  ;;  %v428_v43 = vld [vmem:[%s3822_s22 + $0x70] sm:$0xff] }
  0xb2   : > { %667 = vmatpush1.bf16.msra.mxu0 %v3166_v31  ;;  %780 = vmatpush1.bf16.msra.mxu1 %v3167_v32  ;;  %v3231_v31 = vld [vmem:[#allocation7 + $0x1d0] ss:$8 sps:$4 sm:$0xff]   ;;  %v3236_v32 = vld [vmem:[#allocation7 + $0xc4] ss:$8 sps:$4 sm:$0xff]   ;;  %v470_v1 = vld [vmem:[%s4124_s7] sm:$0xf] }
  0xb3   : > { %1370 = vmatprep.subr.bf16.mxu0 %v3170_v35  ;;  %1483 = vmatprep.subr.bf16.mxu1 %v3173_v36  ;;  %v427_v35 = vld [vmem:[%s3822_s22 + $0x68] sm:$0xff]  ;;  %v3255_v53 = vld [vmem:[#allocation7 + $0x190] ss:$8 sps:$4 sm:$0xff]  }
  0xb4   : > { %v3234_v36 = vld [vmem:[#allocation7 + $0xc0] ss:$8 sps:$4 sm:$0xff]   ;;  %v3263_v54 = vld [vmem:[#allocation7 + $0x184] ss:$8 sps:$4 sm:$0xff]  }
  0xb5   : > { %685 = vmatmul.mubr.bf16.vlgmr.msra.gmra.mxu0 %v430_v37  ;;  %798 = vmatmul.mubr.bf16.vlgmr.msra.gmra.mxu1 %v430_v37  ;;  %v3237_v37 = vld [vmem:[#allocation7 + $0x1c0] ss:$8 sps:$4 sm:$0xff]  }
  0xb6   : > { %694 = vmatprep.mubr.bf16.mxu0 %v3579_v0  ;;  %807 = vmatprep.mubr.bf16.mxu1 %v3579_v0 }
  0xb7   : > { %1371 = vmatpush1.bf16.msra.mxu0 %v3168_v38  ;;  %1484 = vmatpush1.bf16.msra.mxu1 %v3171_v39  ;;  %v3242_v38 = vld [vmem:[#allocation7 + $0xb4] ss:$8 sps:$4 sm:$0xff]  }
  0xb8   : > { %1372 = vmatprep.subr.bf16.mxu0 %v3176_v40  ;;  %1485 = vmatprep.subr.bf16.mxu1 %v3179_v41  ;;  %v3245_v39 = vld [vmem:[#allocation7 + $0x1b4] ss:$8 sps:$4 sm:$0xff]   ;;  %v436_v40 = vpack.c.bf16 %v427_v35, %v426_v34  ;;  %v3240_v41 = vld [vmem:[#allocation7 + $0xb0] ss:$8 sps:$4 sm:$0xff]  }
  0xbb   : > { %1373 = vmatpush1.bf16.msra.mxu0 %v3174_v44  ;;  %1486 = vmatpush1.bf16.msra.mxu1 %v3177_v45  ;;  %v429_v44 = vld [vmem:[%s3822_s22 + $0x78] sm:$0xff]  ;;  %s4050_s22 = scalar_lea.vmem [#allocation14], %s2625_s2  ;;  %s2779_s2 = sshll.u32 %s3649_s11, 11 }
  0xbc   : > { %1374 = vmatprep.subr.bf16.mxu0 %v3182_v46  ;;  %1487 = vmatprep.subr.bf16.mxu1 %v3185_v47  ;;  %v437_v45 = vpack.c.bf16 %v429_v44, %v428_v43  ;;  %v3248_v46 = vld [vmem:[#allocation7 + $0xa4] ss:$8 sps:$4 sm:$0xff]   ;;  %s2482_s12 = sshll.u32 %s4050_s22, 4  ;;  %s4071_s9 = scalar_lea.hbm %s4125_s8, %s2779_s2  ;;  %s4073_s12 = int_to_ptr.vmem [resolvable:$true] %s2482_s12 }
  0xbd   : > { %695 = vmatmul.mubr.bf16.gmra.mxu0 %v431_v48  ;;  %808 = vmatmul.mubr.bf16.gmra.mxu1 %v431_v48  ;;  %v3251_v47 = vld [vmem:[#allocation7 + $0x1a4] ss:$8 sps:$4 sm:$0xff]   ;;  %v3246_v48 = vld [vmem:[#allocation7 + $0xa0] ss:$8 sps:$4 sm:$0xff]   ;;  %s3488_s11 = scalar_lea.vmem %s4073_s12, 2048  ;;  %p3495_p6 = scmp.lt.s32.totalorder %s4073_s12, %s3493_s19 }
  0xbe   : > { %704 = vmatprep.mubr.bf16.mxu0 %v3579_v0  ;;  %817 = vmatprep.mubr.bf16.mxu1 %v3579_v0  ;;  %p3489_p12 = scmp.ne.s32.totalorder %s4073_s12, %s3488_s11  ;;  %p3496_p10 = scmp.lt.s32.totalorder %s3494_s26, %s3488_s11 }
  0xbf   : > { %1375 = vmatpush1.bf16.msra.mxu0 %v3180_v49  ;;  %1488 = vmatpush1.bf16.msra.mxu1 %v3183_v50  ;;  %v3249_v49 = vld [vmem:[#allocation7 + $0x1a0] ss:$8 sps:$4 sm:$0xff]   ;;  %v3254_v50 = vld [vmem:[#allocation7 + $0x94] ss:$8 sps:$4 sm:$0xff]  }
  0xc0   : > { %1376 = vmatprep.subr.bf16.mxu0 %v3188_v51  ;;  %1489 = vmatprep.subr.bf16.mxu1 %v3191_v52  ;;  %v3257_v51 = vld [vmem:[#allocation7 + $0x194] ss:$8 sps:$4 sm:$0xff]   ;;  %v3252_v52 = vld [vmem:[#allocation7 + $0x90] ss:$8 sps:$4 sm:$0xff]   ;;  %p3490_p0 = pnand %p3489_p12, %p4154_p13  ;;  %p3497_p1 = por %p3496_p10, %p3495_p6 }
  0xc2   : > { %p3491_p2 = pneg %p3490_p0 }
  0xc3   : > { %1377 = vmatpush1.bf16.msra.mxu0 %v3186_v55  ;;  %1490 = vmatpush1.bf16.msra.mxu1 %v3189_v56  ;;  %v3258_v55 = vld [vmem:[#allocation7 + $0x80] ss:$8 sps:$4 sm:$0xff]  }
  0xc4   : > { %1378 = vmatprep.subr.bf16.mxu0 %v3194_v57  ;;  %1491 = vmatprep.subr.bf16.mxu1 %v3197_v58  ;;  %v3261_v56 = vld [vmem:[#allocation7 + $0x180] ss:$8 sps:$4 sm:$0xff]   ;;  %v3264_v57 = vld [vmem:[#allocation8 + $0x78] sm:$0xff]   ;;  %v472_v58 = vlaneseq  ;;  %p3498_p3 = pnand %p3497_p1, %p3491_p2 }
  0xc5   : > { %705 = vmatmul.mubr.bf16.gmra.mxu0 %v432_v59  ;;  %818 = vmatmul.mubr.bf16.gmra.mxu1 %v432_v59 }
  0xc6   : > { %714 = vmatprep.mubr.bf16.mxu0 %v3579_v0  ;;  %827 = vmatprep.mubr.bf16.mxu1 %v3579_v0  ;;  %v3872_v59 = vshrl.u32 %v472_v58, 7 }
  0xc7   : > { %1379 = vmatpush1.bf16.msra.mxu0 %v3192_v60  ;;  %1492 = vmatpush1.bf16.msra.mxu1 %v3195_v61 }
  0xc8   : > { %1380 = vmatprep.subr.bf16.mxu0 %v3200_v62  ;;  %1493 = vmatprep.subr.bf16.mxu1 %v3203_v63  ;;  %v478_v60 = vsub.s32 1, %v3872_v59  ;;  %v486_v61 = vsub.s32 3, %v3872_v59  ;;  %v474_v62 = vsub.s32 0, %v3872_v59  ;;  %v482_v63 = vsub.s32 2, %v3872_v59 }
  0xcb   : > { %1381 = vmatpush1.bf16.msra.mxu0 %v3198_v3  ;;  %1494 = vmatpush1.bf16.msra.mxu1 %v3201_v4  ;;  %v3883_v4 = vrot.slane %v470_v1, %v478_v60 }
  0xcc   : > { %1382 = vmatprep.subr.bf16.mxu0 %v3206_v5  ;;  %1495 = vmatprep.subr.bf16.mxu1 %v3209_v6  ;;  %v3885_v5 = vrot.slane %v470_v1, %v486_v61  ;;  %v3889_v6 = vrot.slane %v470_v1, %v474_v62 }
  0xcd   : > { %715 = vmatmul.mubr.bf16.gmra.mxu0 %v433_v7  ;;  %828 = vmatmul.mubr.bf16.gmra.mxu1 %v433_v7  ;;  %v3891_v7 = vrot.slane %v470_v1, %v482_v63 }
  0xce   : > { %724 = vmatprep.mubr.bf16.mxu0 %v3579_v0  ;;  %837 = vmatprep.mubr.bf16.mxu1 %v3579_v0 }
  0xcf   : > { %1383 = vmatpush1.bf16.msra.mxu0 %v3204_v8  ;;  %1496 = vmatpush1.bf16.msra.mxu1 %v3207_v9 }
  0xd0   : > { %1384 = vmatprep.subr.bf16.mxu0 %v3212_v11  ;;  %1497 = vmatprep.subr.bf16.mxu1 %v3215_v12 }
  0xd3   : > { %1385 = vmatpush1.bf16.msra.mxu0 %v3210_v14  ;;  %1498 = vmatpush1.bf16.msra.mxu1 %v3213_v15 }
  0xd4   : > { %1386 = vmatprep.subr.bf16.mxu0 %v3218_v16  ;;  %1499 = vmatprep.subr.bf16.mxu1 %v3221_v17 }
  0xd5   : > { %725 = vmatmul.mubr.bf16.gmra.mxu0 %v434_v18  ;;  %838 = vmatmul.mubr.bf16.gmra.mxu1 %v434_v18 }
  0xd6   : > { %734 = vmatprep.mubr.bf16.mxu0 %v3579_v0  ;;  %847 = vmatprep.mubr.bf16.mxu1 %v3579_v0 }
  0xd7   : > { %1387 = vmatpush2.bf16.msra.mxu0 %v3216_v19  ;;  %1500 = vmatpush2.bf16.msra.mxu1 %v3219_v20 }
  0xd8   : > { %1388 = vmatprep.subr.bf16.mxu0 %v3224_v21  ;;  %1501 = vmatprep.subr.bf16.mxu1 %v3227_v22 }
  0xdb   : > { %1389 = vmatpush2.bf16.msra.mxu0 %v3222_v25  ;;  %1502 = vmatpush2.bf16.msra.mxu1 %v3225_v26 }
  0xdc   : > { %1390 = vmatprep.subr.bf16.mxu0 %v3230_v27  ;;  %1503 = vmatprep.subr.bf16.mxu1 %v3233_v28 }
  0xdd   : > { %735 = vmatmul.mubr.bf16.gmra.mxu0 %v435_v29  ;;  %848 = vmatmul.mubr.bf16.gmra.mxu1 %v435_v29 }
  0xde   : > { %744 = vmatprep.mubr.bf16.mxu0 %v3579_v0  ;;  %857 = vmatprep.mubr.bf16.mxu1 %v3579_v0 }
  0xdf   : > { %1391 = vmatpush2.bf16.msra.mxu0 %v3228_v30  ;;  %1504 = vmatpush2.bf16.msra.mxu1 %v3231_v31 }
  0xe0   : > { %1392 = vmatprep.subr.bf16.mxu0 %v3236_v32  ;;  %1505 = vmatprep.subr.bf16.mxu1 %v3239_v33 }
  0xe3   : > { %1393 = vmatpush2.bf16.msra.mxu0 %v3234_v36  ;;  %1506 = vmatpush2.bf16.msra.mxu1 %v3237_v37  ;;  %v3265_v36 = vld [vmem:[#allocation8 + $0x38] sm:$0xff]  }
  0xe4   : > { %1394 = vmatprep.subr.bf16.mxu0 %v3242_v38  ;;  %1507 = vmatprep.subr.bf16.mxu1 %v3245_v39 }
  0xe5   : > { %745 = vmatmul.mubr.bf16.gmra.mxu0 %v436_v40  ;;  %858 = vmatmul.mubr.bf16.gmra.mxu1 %v436_v40 }
  0xe6   : > { %754 = vmatprep.mubr.bf16.mxu0 %v3579_v0  ;;  %867 = vmatprep.mubr.bf16.mxu1 %v3579_v0  ;;  %v3260_v0 = vld [vmem:[#allocation7 + $0x84] ss:$8 sps:$4 sm:$0xff]  }
  0xe7   : > { %1395 = vmatpush2.bf16.msra.mxu0 %v3240_v41  ;;  %1508 = vmatpush2.bf16.msra.mxu1 %v3243_v42  ;;  %v3266_v42 = vld [vmem:[#allocation8 + $0x70] sm:$0xff]  }
  0xe8   : > { %1396 = vmatprep.subr.bf16.mxu0 %v3248_v46  ;;  %1509 = vmatprep.subr.bf16.mxu1 %v3251_v47 }
  0xeb   : > { %1397 = vmatpush2.bf16.msra.mxu0 %v3246_v48  ;;  %1510 = vmatpush2.bf16.msra.mxu1 %v3249_v49 }
  0xec   : > { %1398 = vmatprep.subr.bf16.mxu0 %v3254_v50  ;;  %1511 = vmatprep.subr.bf16.mxu1 %v3257_v51 }
  0xed   : > { %755 = vmatmul.mubr.bf16.gmra.mxu0 %v437_v45  ;;  %868 = vmatmul.mubr.bf16.gmra.mxu1 %v437_v45 }
  0xef   : > { %1399 = vmatpush2.bf16.msra.mxu0 %v3252_v52  ;;  %1512 = vmatpush2.bf16.msra.mxu1 %v3255_v53  ;;  %v3267_v52 = vld [vmem:[#allocation8 + $0x30] sm:$0xff]  }
  0xf0   : > { %1400 = vmatprep.subr.bf16.mxu0 %v3260_v0  ;;  %1513 = vmatprep.subr.bf16.mxu1 %v3263_v54 }
  0xf3   : > { %1401 = vmatpush2.bf16.msra.mxu0 %v3258_v55  ;;  %1514 = vmatpush2.bf16.msra.mxu1 %v3261_v56  ;;  %v3268_v56 = vld [vmem:[#allocation8 + $0x68] sm:$0xff]  }
  0xf4   : > { %2780 = vmatprep.subr.bf16.mxu0 %v3264_v57 }
 0x175   : > { %v686_v2 = vpop.f32.mrf.mxu0  ;;  %v799_v3 = vpop.f32.mrf.mxu1 }
 0x176   : > { %v687_v16 = vadd.f32 %v686_v2, %v3889_v6  ;;  %v800_v17 = vadd.f32 %v799_v3, %v3891_v7 }
 0x177   : > { %v688_v8 = vpop.f32.mrf.mxu0  ;;  %v801_v9 = vpop.f32.mrf.mxu1 }
 0x178   : > { %v689_v12 = vadd.f32 %v688_v8, %v3883_v4  ;;  %v802_v13 = vadd.f32 %v801_v9, %v3885_v5  ;;  %v878_v30 = vmax.f32 %v687_v16, 0.0  ;;  %v880_v31 = vmax.f32 %v800_v17, 0.0  ;;  %v3270_v17 = vld [vmem:[#allocation8 + $0x60] sm:$0xff]  }
 0x179   : > { %v690_v10 = vpop.f32.mrf.mxu0  ;;  %v803_v11 = vpop.f32.mrf.mxu1 }
 0x17a   : > { %v691_v14 = vadd.f32 %v690_v10, %v3889_v6  ;;  %v804_v15 = vadd.f32 %v803_v11, %v3891_v7  ;;  %v879_v26 = vmax.f32 %v689_v12, 0.0  ;;  %v881_v27 = vmax.f32 %v802_v13, 0.0  ;;  %v3269_v11 = vld [vmem:[#allocation8 + $0x28] sm:$0xff]  }
 0x17b   : > { %v692_v18 = vpop.f32.mrf.mxu0  ;;  %v805_v19 = vpop.f32.mrf.mxu1 }
 0x17c   : > { %v693_v20 = vadd.f32 %v692_v18, %v3883_v4  ;;  %v806_v21 = vadd.f32 %v805_v19, %v3885_v5  ;;  %v882_v22 = vmax.f32 %v691_v14, 0.0  ;;  %v884_v23 = vmax.f32 %v804_v15, 0.0 }
 0x17d   : > { %v696_v24 = vpop.f32.mrf.mxu0  ;;  %v809_v25 = vpop.f32.mrf.mxu1 }
 0x17e   : > { %v883_v28 = vmax.f32 %v693_v20, 0.0  ;;  %v885_v29 = vmax.f32 %v806_v21, 0.0  ;;  %v942_v37 = vpack.c.bf16 %v882_v22, %v878_v30  ;;  %v944_v38 = vpack.c.bf16 %v884_v23, %v880_v31 }
 0x17f   : > { %v698_v32 = vpop.f32.mrf.mxu0  ;;  %v811_v33 = vpop.f32.mrf.mxu1  ;;  %v697_v46 = vadd.f32 %v696_v24, %v3889_v6  ;;  %v810_v47 = vadd.f32 %v809_v25, %v3891_v7 }
 0x180   : > { %v943_v34 = vpack.c.bf16 %v883_v28, %v879_v26  ;;  %v945_v35 = vpack.c.bf16 %v885_v29, %v881_v27  ;;  %v699_v39 = vadd.f32 %v698_v32, %v3883_v4  ;;  %v812_v43 = vadd.f32 %v811_v33, %v3885_v5  ;;  %v3271_v27 = vld [vmem:[#allocation8 + $0x20] sm:$0xff]   ;;  %v3272_v32 = vld [vmem:[#allocation8 + $0x58] sm:$0xff]  }
 0x181   : > { %v700_v40 = vpop.f32.mrf.mxu0  ;;  %v813_v41 = vpop.f32.mrf.mxu1  ;;  %v886_v1 = vmax.f32 %v697_v46, 0.0  ;;  %v888_v2 = vmax.f32 %v810_v47, 0.0 }
 0x182   : > { %v701_v44 = vadd.f32 %v700_v40, %v3889_v6  ;;  %v814_v45 = vadd.f32 %v813_v41, %v3891_v7  ;;  %1402 = vmatprep.mubr.bf16.mxu0 %v943_v34  ;;  %1515 = vmatprep.mubr.bf16.mxu1 %v945_v35  ;;  %v887_v57 = vmax.f32 %v699_v39, 0.0  ;;  %v889_v58 = vmax.f32 %v812_v43, 0.0  ;;  %v3273_v43 = vld [vmem:[#allocation8 + $0x18] sm:$0xff]  }
 0x183   : > { %v702_v48 = vpop.f32.mrf.mxu0  ;;  %v815_v49 = vpop.f32.mrf.mxu1  ;;  %1403 = vmatmul.mubr.bf16.vlgmr.msra.gmra.mxu0 %v942_v37  ;;  %1516 = vmatmul.mubr.bf16.vlgmr.msra.gmra.mxu1 %v944_v38 }
 0x184   : > { %v703_v50 = vadd.f32 %v702_v48, %v3883_v4  ;;  %v816_v51 = vadd.f32 %v815_v49, %v3885_v5  ;;  %2781 = vmatpush3.bf16.msra.mxu0 %v3265_v36  ;;  %v890_v53 = vmax.f32 %v701_v44, 0.0  ;;  %v892_v0 = vmax.f32 %v814_v45, 0.0  ;;  %v3274_v49 = vld [vmem:[#allocation8 + $0x50] sm:$0xff]  }
 0x185   : > { %v706_v54 = vpop.f32.mrf.mxu0  ;;  %v819_v55 = vpop.f32.mrf.mxu1  ;;  %2782 = vmatprep.subr.bf16.mxu0 %v3266_v42 }
 0x186   : > { %v891_v61 = vmax.f32 %v703_v50, 0.0  ;;  %v893_v63 = vmax.f32 %v816_v51, 0.0  ;;  %v946_v12 = vpack.c.bf16 %v890_v53, %v886_v1  ;;  %v948_v13 = vpack.c.bf16 %v892_v0, %v888_v2 }
 0x187   : > { %v708_v3 = vpop.f32.mrf.mxu0  ;;  %v821_v8 = vpop.f32.mrf.mxu1  ;;  %v707_v21 = vadd.f32 %v706_v54, %v3889_v6  ;;  %v820_v22 = vadd.f32 %v819_v55, %v3891_v7 }
 0x188   : > { %v947_v9 = vpack.c.bf16 %v891_v61, %v887_v57  ;;  %v949_v10 = vpack.c.bf16 %v893_v63, %v889_v58  ;;  %2783 = vmatpush3.bf16.msra.mxu0 %v3267_v52  ;;  %v709_v14 = vadd.f32 %v708_v3, %v3883_v4  ;;  %v822_v18 = vadd.f32 %v821_v8, %v3885_v5  ;;  %v3275_v58 = vld [vmem:[#allocation8 + $0x10] sm:$0xff]   ;;  %v3276_v3 = vld [vmem:[#allocation8 + $0x48] sm:$0xff]  }
 0x189   : > { %v710_v15 = vpop.f32.mrf.mxu0  ;;  %v823_v16 = vpop.f32.mrf.mxu1  ;;  %2784 = vmatprep.subr.bf16.mxu0 %v3268_v56  ;;  %v894_v37 = vmax.f32 %v707_v21, 0.0  ;;  %v896_v38 = vmax.f32 %v820_v22, 0.0 }
 0x18a   : > { %v711_v19 = vadd.f32 %v710_v15, %v3889_v6  ;;  %v824_v20 = vadd.f32 %v823_v16, %v3891_v7  ;;  %1412 = vmatprep.mubr.bf16.mxu0 %v947_v9  ;;  %1525 = vmatprep.mubr.bf16.mxu1 %v949_v10  ;;  %v895_v33 = vmax.f32 %v709_v14, 0.0  ;;  %v897_v34 = vmax.f32 %v822_v18, 0.0 }
 0x18b   : > { %v712_v23 = vpop.f32.mrf.mxu0  ;;  %v825_v24 = vpop.f32.mrf.mxu1  ;;  %1413 = vmatmul.mubr.bf16.gmra.mxu0 %v946_v12  ;;  %1526 = vmatmul.mubr.bf16.gmra.mxu1 %v948_v13 }
 0x18c   : > { %v713_v25 = vadd.f32 %v712_v23, %v3883_v4  ;;  %v826_v26 = vadd.f32 %v825_v24, %v3885_v5  ;;  %2785 = vmatpush3.bf16.msra.mxu0 %v3269_v11  ;;  %v898_v28 = vmax.f32 %v711_v19, 0.0  ;;  %v900_v29 = vmax.f32 %v824_v20, 0.0 }
 0x18d   : > { %v716_v30 = vpop.f32.mrf.mxu0  ;;  %v829_v31 = vpop.f32.mrf.mxu1  ;;  %2786 = vmatprep.subr.bf16.mxu0 %v3270_v17 }
 0x18e   : > { %v899_v35 = vmax.f32 %v713_v25, 0.0  ;;  %v901_v36 = vmax.f32 %v826_v26, 0.0  ;;  %v950_v44 = vpack.c.bf16 %v898_v28, %v894_v37  ;;  %v952_v45 = vpack.c.bf16 %v900_v29, %v896_v38 }
 0x18f   : > { %v718_v39 = vpop.f32.mrf.mxu0  ;;  %v831_v40 = vpop.f32.mrf.mxu1  ;;  %v717_v53 = vadd.f32 %v716_v30, %v3889_v6  ;;  %v830_v0 = vadd.f32 %v829_v31, %v3891_v7 }
 0x190   : > { %v951_v41 = vpack.c.bf16 %v899_v35, %v895_v33  ;;  %v953_v42 = vpack.c.bf16 %v901_v36, %v897_v34  ;;  %2787 = vmatpush3.bf16.msra.mxu0 %v3271_v27  ;;  %v719_v46 = vadd.f32 %v718_v39, %v3883_v4  ;;  %v832_v50 = vadd.f32 %v831_v40, %v3885_v5 }
 0x191   : > { %v720_v47 = vpop.f32.mrf.mxu0  ;;  %v833_v48 = vpop.f32.mrf.mxu1  ;;  %2788 = vmatprep.subr.bf16.mxu0 %v3272_v32  ;;  %v902_v12 = vmax.f32 %v717_v53, 0.0  ;;  %v904_v13 = vmax.f32 %v830_v0, 0.0 }
 0x192   : > { %v721_v51 = vadd.f32 %v720_v47, %v3889_v6  ;;  %v834_v52 = vadd.f32 %v833_v48, %v3891_v7  ;;  %1422 = vmatprep.mubr.bf16.mxu0 %v951_v41  ;;  %1535 = vmatprep.mubr.bf16.mxu1 %v953_v42  ;;  %v903_v8 = vmax.f32 %v719_v46, 0.0  ;;  %v905_v9 = vmax.f32 %v832_v50, 0.0 }
 0x193   : > { %v722_v54 = vpop.f32.mrf.mxu0  ;;  %v835_v55 = vpop.f32.mrf.mxu1  ;;  %1423 = vmatmul.mubr.bf16.gmra.mxu0 %v950_v44  ;;  %1536 = vmatmul.mubr.bf16.gmra.mxu1 %v952_v45 }
 0x194   : > { %v723_v56 = vadd.f32 %v722_v54, %v3883_v4  ;;  %v836_v57 = vadd.f32 %v835_v55, %v3885_v5  ;;  %2789 = vmatpush3.bf16.msra.mxu0 %v3273_v43  ;;  %v906_v61 = vmax.f32 %v721_v51, 0.0  ;;  %v908_v63 = vmax.f32 %v834_v52, 0.0 }
 0x195   : > { %v726_v1 = vpop.f32.mrf.mxu0  ;;  %v839_v2 = vpop.f32.mrf.mxu1  ;;  %2790 = vmatprep.subr.bf16.mxu0 %v3274_v49 }
 0x196   : > { %v907_v10 = vmax.f32 %v723_v56, 0.0  ;;  %v909_v11 = vmax.f32 %v836_v57, 0.0  ;;  %v954_v18 = vpack.c.bf16 %v906_v61, %v902_v12  ;;  %v956_v19 = vpack.c.bf16 %v908_v63, %v904_v13 }
 0x197   : > { %v728_v14 = vpop.f32.mrf.mxu0  ;;  %v841_v15 = vpop.f32.mrf.mxu1  ;;  %v727_v26 = vadd.f32 %v726_v1, %v3889_v6  ;;  %v840_v27 = vadd.f32 %v839_v2, %v3891_v7 }
 0x198   : > { %v955_v16 = vpack.c.bf16 %v907_v10, %v903_v8  ;;  %v957_v17 = vpack.c.bf16 %v909_v11, %v905_v9  ;;  %2791 = vmatpush3.bf16.msra.mxu0 %v3275_v58  ;;  %v729_v20 = vadd.f32 %v728_v14, %v3883_v4  ;;  %v842_v23 = vadd.f32 %v841_v15, %v3885_v5 }
 0x199   : > { %v730_v21 = vpop.f32.mrf.mxu0  ;;  %v843_v22 = vpop.f32.mrf.mxu1  ;;  %2792 = vmatprep.subr.bf16.mxu0 %v3276_v3  ;;  %v910_v40 = vmax.f32 %v727_v26, 0.0  ;;  %v912_v41 = vmax.f32 %v840_v27, 0.0 }
 0x19a   : > { %v731_v24 = vadd.f32 %v730_v21, %v3889_v6  ;;  %v844_v25 = vadd.f32 %v843_v22, %v3891_v7  ;;  %1432 = vmatprep.mubr.bf16.mxu0 %v955_v16  ;;  %1545 = vmatprep.mubr.bf16.mxu1 %v957_v17  ;;  %v911_v36 = vmax.f32 %v729_v20, 0.0  ;;  %v913_v37 = vmax.f32 %v842_v23, 0.0 }
 0x19b   : > { %v732_v28 = vpop.f32.mrf.mxu0  ;;  %v845_v29 = vpop.f32.mrf.mxu1  ;;  %1433 = vmatmul.mubr.bf16.gmra.mxu0 %v954_v18  ;;  %1546 = vmatmul.mubr.bf16.gmra.mxu1 %v956_v19 }
 0x19c   : > { %v733_v30 = vadd.f32 %v732_v28, %v3883_v4  ;;  %v846_v31 = vadd.f32 %v845_v29, %v3885_v5  ;;  %v914_v32 = vmax.f32 %v731_v24, 0.0  ;;  %v916_v33 = vmax.f32 %v844_v25, 0.0 }
 0x19d   : > { %v736_v34 = vpop.f32.mrf.mxu0  ;;  %v849_v35 = vpop.f32.mrf.mxu1 }
 0x19e   : > { %v915_v38 = vmax.f32 %v733_v30, 0.0  ;;  %v917_v39 = vmax.f32 %v846_v31, 0.0  ;;  %v958_v46 = vpack.c.bf16 %v914_v32, %v910_v40  ;;  %v960_v47 = vpack.c.bf16 %v916_v33, %v912_v41 }
 0x19f   : > { %v738_v42 = vpop.f32.mrf.mxu0  ;;  %v851_v43 = vpop.f32.mrf.mxu1  ;;  %v737_v0 = vadd.f32 %v736_v34, %v3889_v6  ;;  %v850_v54 = vadd.f32 %v849_v35, %v3891_v7 }
 0x1a0   : > { %v959_v44 = vpack.c.bf16 %v915_v38, %v911_v36  ;;  %v961_v45 = vpack.c.bf16 %v917_v39, %v913_v37  ;;  %v739_v48 = vadd.f32 %v738_v42, %v3883_v4  ;;  %v852_v51 = vadd.f32 %v851_v43, %v3885_v5 }
 0x1a1   : > { %v740_v49 = vpop.f32.mrf.mxu0  ;;  %v853_v50 = vpop.f32.mrf.mxu1  ;;  %v918_v11 = vmax.f32 %v737_v0, 0.0  ;;  %v920_v12 = vmax.f32 %v850_v54, 0.0 }
 0x1a2   : > { %v741_v52 = vadd.f32 %v740_v49, %v3889_v6  ;;  %v854_v53 = vadd.f32 %v853_v50, %v3891_v7  ;;  %1442 = vmatprep.mubr.bf16.mxu0 %v959_v44  ;;  %1555 = vmatprep.mubr.bf16.mxu1 %v961_v45  ;;  %v919_v3 = vmax.f32 %v739_v48, 0.0  ;;  %v921_v8 = vmax.f32 %v852_v51, 0.0 }
 0x1a3   : > { %v742_v55 = vpop.f32.mrf.mxu0  ;;  %v855_v56 = vpop.f32.mrf.mxu1  ;;  %1443 = vmatmul.mubr.bf16.gmra.mxu0 %v958_v46  ;;  %1556 = vmatmul.mubr.bf16.gmra.mxu1 %v960_v47 }
 0x1a4   : > { %v743_v57 = vadd.f32 %v742_v55, %v3883_v4  ;;  %v856_v58 = vadd.f32 %v855_v56, %v3885_v5  ;;  %v922_v61 = vmax.f32 %v741_v52, 0.0  ;;  %v924_v63 = vmax.f32 %v854_v53, 0.0 }
 0x1a5   : > { %v746_v1 = vpop.f32.mrf.mxu0  ;;  %v859_v2 = vpop.f32.mrf.mxu1 }
 0x1a6   : > { %v923_v9 = vmax.f32 %v743_v57, 0.0  ;;  %v925_v10 = vmax.f32 %v856_v58, 0.0  ;;  %v962_v17 = vpack.c.bf16 %v922_v61, %v918_v11  ;;  %v964_v18 = vpack.c.bf16 %v924_v63, %v920_v12  ;;  %v3277_v12 = vld [vmem:[#allocation8 + $0x8] sm:$0xff]  }
 0x1a7   : > { %v748_v13 = vpop.f32.mrf.mxu0  ;;  %v861_v14 = vpop.f32.mrf.mxu1  ;;  %v747_v25 = vadd.f32 %v746_v1, %v3889_v6  ;;  %v860_v26 = vadd.f32 %v859_v2, %v3891_v7  ;;  %2793 = vmatpush3.bf16.msra.mxu0 %v3277_v12 }
 0x1a8   : > { %v963_v15 = vpack.c.bf16 %v923_v9, %v919_v3  ;;  %v965_v16 = vpack.c.bf16 %v925_v10, %v921_v8  ;;  %v749_v19 = vadd.f32 %v748_v13, %v3883_v4  ;;  %v862_v22 = vadd.f32 %v861_v14, %v3885_v5  ;;  %v3280_v13 = vld [vmem:[#allocation10 + $0x38] sm:$0xff]   ;;  %v3281_v14 = vld [vmem:[#allocation10 + $0x30] sm:$0xff]  }
 0x1a9   : > { %v750_v20 = vpop.f32.mrf.mxu0  ;;  %v863_v21 = vpop.f32.mrf.mxu1  ;;  %v926_v39 = vmax.f32 %v747_v25, 0.0  ;;  %v928_v40 = vmax.f32 %v860_v26, 0.0  ;;  %2892 = vmatprep.subr.bf16.mxu1 %v3280_v13 }
 0x1aa   : > { %v751_v23 = vadd.f32 %v750_v20, %v3889_v6  ;;  %v864_v24 = vadd.f32 %v863_v21, %v3891_v7  ;;  %1452 = vmatprep.mubr.bf16.mxu0 %v963_v15  ;;  %1565 = vmatprep.mubr.bf16.mxu1 %v965_v16  ;;  %v927_v35 = vmax.f32 %v749_v19, 0.0  ;;  %v929_v36 = vmax.f32 %v862_v22, 0.0  ;;  %v3282_v15 = vld [vmem:[#allocation10 + $0x28] sm:$0xff]   ;;  %v1038_v16 = vld [vmem:[%s4124_s7 + $0x4] sm:$0x3] }
 0x1ab   : > { %v752_v27 = vpop.f32.mrf.mxu0  ;;  %v865_v28 = vpop.f32.mrf.mxu1  ;;  %1453 = vmatmul.mubr.bf16.gmra.mxu0 %v962_v17  ;;  %1566 = vmatmul.mubr.bf16.gmra.mxu1 %v964_v18  ;;  %v3962_v17 = vrot.slane %v1038_v16, %v478_v60  ;;  %v3966_v18 = vrot.slane %v1038_v16, %v474_v62 }
 0x1ac   : > { %v753_v29 = vadd.f32 %v752_v27, %v3883_v4  ;;  %v866_v30 = vadd.f32 %v865_v28, %v3885_v5  ;;  %v930_v31 = vmax.f32 %v751_v23, 0.0  ;;  %v932_v32 = vmax.f32 %v864_v24, 0.0  ;;  %2893 = vmatpush3.bf16.msra.mxu1 %v3280_v13 }
 0x1ad   : > { %v756_v33 = vpop.f32.mrf.mxu0  ;;  %v869_v34 = vpop.f32.mrf.mxu1  ;;  %2894 = vmatprep.subr.bf16.mxu1 %v3281_v14 }
 0x1ae   : > { %v931_v37 = vmax.f32 %v753_v29, 0.0  ;;  %v933_v38 = vmax.f32 %v866_v30, 0.0  ;;  %v966_v45 = vpack.c.bf16 %v930_v31, %v926_v39  ;;  %v968_v46 = vpack.c.bf16 %v932_v32, %v928_v40 }
 0x1af   : > { %v758_v41 = vpop.f32.mrf.mxu0  ;;  %v871_v42 = vpop.f32.mrf.mxu1  ;;  %v757_v53 = vadd.f32 %v756_v33, %v3889_v6  ;;  %v870_v0 = vadd.f32 %v869_v34, %v3891_v7 }
 0x1b0   : > { %v967_v43 = vpack.c.bf16 %v931_v37, %v927_v35  ;;  %v969_v44 = vpack.c.bf16 %v933_v38, %v929_v36  ;;  %v759_v47 = vadd.f32 %v758_v41, %v3883_v4  ;;  %v872_v50 = vadd.f32 %v871_v42, %v3885_v5  ;;  %2895 = vmatpush3.bf16.msra.mxu1 %v3281_v14 }
 0x1b1   : > { %v760_v48 = vpop.f32.mrf.mxu0  ;;  %v873_v49 = vpop.f32.mrf.mxu1  ;;  %v934_v8 = vmax.f32 %v757_v53, 0.0  ;;  %v936_v9 = vmax.f32 %v870_v0, 0.0  ;;  %2896 = vmatprep.subr.bf16.mxu1 %v3282_v15 }
 0x1b2   : > { %v761_v51 = vadd.f32 %v760_v48, %v3889_v6  ;;  %v874_v52 = vadd.f32 %v873_v49, %v3891_v7  ;;  %1462 = vmatprep.mubr.bf16.mxu0 %v967_v43  ;;  %1575 = vmatprep.mubr.bf16.mxu1 %v969_v44  ;;  %v935_v63 = vmax.f32 %v759_v47, 0.0  ;;  %v937_v1 = vmax.f32 %v872_v50, 0.0 }
 0x1b3   : > { %v762_v54 = vpop.f32.mrf.mxu0  ;;  %v875_v55 = vpop.f32.mrf.mxu1  ;;  %1463 = vmatmul.mubr.bf16.gmra.mxu0 %v966_v45  ;;  %1576 = vmatmul.mubr.bf16.gmra.mxu1 %v968_v46 }
 0x1b4   : > { %v763_v56 = vadd.f32 %v762_v54, %v3883_v4  ;;  %v876_v57 = vadd.f32 %v875_v55, %v3885_v5  ;;  %v938_v58 = vmax.f32 %v761_v51, 0.0  ;;  %v940_v61 = vmax.f32 %v874_v52, 0.0  ;;  %v3278_v4 = vld [vmem:[#allocation8 + $0x40] sm:$0xff]   ;;  %2897 = vmatpush3.bf16.msra.mxu1 %v3282_v15 }
 0x1b5   : > { %v3279_v5 = vld [vmem:[#allocation8] sm:$0xff]   ;;  %2794 = vmatprep.subr.bf16.mxu0 %v3278_v4 }
 0x1b6   : > { %v939_v2 = vmax.f32 %v763_v56, 0.0  ;;  %v941_v3 = vmax.f32 %v876_v57, 0.0  ;;  %v970_v11 = vpack.c.bf16 %v938_v58, %v934_v8  ;;  %v972_v7 = vpack.c.bf16 %v940_v61, %v936_v9  ;;  %2795 = vmatpush3.bf16.msra.mxu0 %v3279_v5 }
 0x1b8   : > { %v971_v10 = vpack.c.bf16 %v939_v2, %v935_v63  ;;  %v973_v6 = vpack.c.bf16 %v941_v3, %v937_v1 }
 0x1ba   : > { %1472 = vmatprep.mubr.bf16.mxu0 %v971_v10  ;;  %1585 = vmatprep.mubr.bf16.mxu1 %v973_v6 }
 0x1bb   : > { %1473 = vmatmul.mubr.bf16.gmra.mxu0 %v970_v11  ;;  %1586 = vmatmul.mubr.bf16.gmra.mxu1 %v972_v7 }
 0x243   : > { %v1404_v19 = vpop.f32.mrf.mxu0  ;;  %v1517_v20 = vpop.f32.mrf.mxu1 }
 0x244   : > { %v1405_v24 = vadd.f32 %v1404_v19, %v3966_v18 }
 0x245   : > { %v1406_v21 = vpop.f32.mrf.mxu0  ;;  %v1519_v22 = vpop.f32.mrf.mxu1 }
 0x246   : > { %v1407_v23 = vadd.f32 %v1406_v21, %v3962_v17  ;;  %v1518_v62 = vadd.f32 %v1517_v20, %v1405_v24 }
 0x247   : > { %v1408_v25 = vpop.f32.mrf.mxu0  ;;  %v1521_v26 = vpop.f32.mrf.mxu1 }
 0x248   : > { %v1409_v27 = vadd.f32 %v1408_v25, %v3966_v18  ;;  %v1520_v60 = vadd.f32 %v1519_v22, %v1407_v23  ;;  %v1596_v40 = vmax.f32 %v1518_v62, 0.0 }
 0x249   : > { %v1410_v28 = vpop.f32.mrf.mxu0  ;;  %v1523_v29 = vpop.f32.mrf.mxu1 }
 0x24a   : > { %v1522_v30 = vadd.f32 %v1521_v26, %v1409_v27  ;;  %v1411_v59 = vadd.f32 %v1410_v28, %v3962_v17  ;;  %v1597_v37 = vmax.f32 %v1520_v60, 0.0 }
 0x24b   : > { %v1414_v31 = vpop.f32.mrf.mxu0  ;;  %v1527_v32 = vpop.f32.mrf.mxu1 }
 0x24c   : > { %v1524_v33 = vadd.f32 %v1523_v29, %v1411_v59  ;;  %v1598_v34 = vmax.f32 %v1522_v30, 0.0  ;;  %v1415_v41 = vadd.f32 %v1414_v31, %v3966_v18 }
 0x24d   : > { %v1416_v35 = vpop.f32.mrf.mxu0  ;;  %v1529_v36 = vpop.f32.mrf.mxu1 }
 0x24e   : > { %v1599_v38 = vmax.f32 %v1524_v33, 0.0  ;;  %v1417_v39 = vadd.f32 %v1416_v35, %v3962_v17  ;;  %v1628_v46 = vpack.c.bf16 %v1598_v34, %v1596_v40  ;;  %v1528_v52 = vadd.f32 %v1527_v32, %v1415_v41 }
 0x24f   : > { %v1418_v42 = vpop.f32.mrf.mxu0  ;;  %v1531_v43 = vpop.f32.mrf.mxu1 }
 0x250   : > { %v1629_v44 = vpack.c.bf16 %v1599_v38, %v1597_v37  ;;  %v1419_v45 = vadd.f32 %v1418_v42, %v3966_v18  ;;  %v1530_v49 = vadd.f32 %v1529_v36, %v1417_v39  ;;  %v1600_v1 = vmax.f32 %v1528_v52, 0.0 }
 0x251   : > { %v1420_v47 = vpop.f32.mrf.mxu0  ;;  %v1533_v48 = vpop.f32.mrf.mxu1 }
 0x252   : > { %v1532_v50 = vadd.f32 %v1531_v43, %v1419_v45  ;;  %v1421_v51 = vadd.f32 %v1420_v47, %v3962_v17  ;;  %1811 = vmatprep.mubr.bf16.mxu0 %v1629_v44  ;;  %v1601_v58 = vmax.f32 %v1530_v49, 0.0 }
 0x253   : > { %v1424_v53 = vpop.f32.mrf.mxu0  ;;  %v1537_v0 = vpop.f32.mrf.mxu1  ;;  %1812 = vmatmul.mubr.bf16.vlgmr.msra.gmra.mxu0 %v1628_v46 }
 0x254   : > { %v1534_v54 = vadd.f32 %v1533_v48, %v1421_v51  ;;  %v1602_v55 = vmax.f32 %v1532_v50, 0.0  ;;  %v1425_v2 = vadd.f32 %v1424_v53, %v3966_v18 }
 0x255   : > { %v1426_v56 = vpop.f32.mrf.mxu0  ;;  %v1539_v57 = vpop.f32.mrf.mxu1 }
 0x256   : > { %v1603_v61 = vmax.f32 %v1534_v54, 0.0  ;;  %v1427_v63 = vadd.f32 %v1426_v56, %v3962_v17  ;;  %v1630_v6 = vpack.c.bf16 %v1602_v55, %v1600_v1  ;;  %v1538_v13 = vadd.f32 %v1537_v0, %v1425_v2 }
 0x257   : > { %v1428_v3 = vpop.f32.mrf.mxu0  ;;  %v1541_v8 = vpop.f32.mrf.mxu1 }
 0x258   : > { %v1631_v9 = vpack.c.bf16 %v1603_v61, %v1601_v58  ;;  %v1429_v10 = vadd.f32 %v1428_v3, %v3966_v18  ;;  %v1540_v12 = vadd.f32 %v1539_v57, %v1427_v63  ;;  %v1604_v25 = vmax.f32 %v1538_v13, 0.0 }
 0x259   : > { %v1430_v11 = vpop.f32.mrf.mxu0  ;;  %v1543_v7 = vpop.f32.mrf.mxu1 }
 0x25a   : > { %v1542_v4 = vadd.f32 %v1541_v8, %v1429_v10  ;;  %v1431_v5 = vadd.f32 %v1430_v11, %v3962_v17  ;;  %1819 = vmatprep.mubr.bf16.mxu0 %v1631_v9  ;;  %v1605_v22 = vmax.f32 %v1540_v12, 0.0 }
 0x25b   : > { %v1434_v14 = vpop.f32.mrf.mxu0  ;;  %v1547_v15 = vpop.f32.mrf.mxu1  ;;  %1820 = vmatmul.mubr.bf16.gmra.mxu0 %v1630_v6 }
 0x25c   : > { %v1544_v16 = vadd.f32 %v1543_v7, %v1431_v5  ;;  %v1606_v19 = vmax.f32 %v1542_v4, 0.0  ;;  %v1435_v26 = vadd.f32 %v1434_v14, %v3966_v18 }
 0x25d   : > { %v1436_v20 = vpop.f32.mrf.mxu0  ;;  %v1549_v21 = vpop.f32.mrf.mxu1 }
 0x25e   : > { %v1607_v23 = vmax.f32 %v1544_v16, 0.0  ;;  %v1437_v24 = vadd.f32 %v1436_v20, %v3962_v17  ;;  %v1632_v30 = vpack.c.bf16 %v1606_v19, %v1604_v25  ;;  %v1548_v34 = vadd.f32 %v1547_v15, %v1435_v26 }
 0x25f   : > { %v1438_v27 = vpop.f32.mrf.mxu0  ;;  %v1551_v28 = vpop.f32.mrf.mxu1 }
 0x260   : > { %v1633_v29 = vpack.c.bf16 %v1607_v23, %v1605_v22  ;;  %v1439_v60 = vadd.f32 %v1438_v27, %v3966_v18  ;;  %v1550_v31 = vadd.f32 %v1549_v21, %v1437_v24  ;;  %v1608_v44 = vmax.f32 %v1548_v34, 0.0 }
 0x261   : > { %v1440_v59 = vpop.f32.mrf.mxu0  ;;  %v1553_v62 = vpop.f32.mrf.mxu1 }
 0x262   : > { %v1552_v32 = vadd.f32 %v1551_v28, %v1439_v60  ;;  %v1441_v33 = vadd.f32 %v1440_v59, %v3962_v17  ;;  %1827 = vmatprep.mubr.bf16.mxu0 %v1633_v29  ;;  %v1609_v41 = vmax.f32 %v1550_v31, 0.0 }
 0x263   : > { %v1444_v35 = vpop.f32.mrf.mxu0  ;;  %v1557_v36 = vpop.f32.mrf.mxu1  ;;  %1828 = vmatmul.mubr.bf16.gmra.mxu0 %v1632_v30 }
 0x264   : > { %v1554_v37 = vadd.f32 %v1553_v62, %v1441_v33  ;;  %v1610_v38 = vmax.f32 %v1552_v32, 0.0  ;;  %v1445_v45 = vadd.f32 %v1444_v35, %v3966_v18 }
 0x265   : > { %v1446_v39 = vpop.f32.mrf.mxu0  ;;  %v1559_v40 = vpop.f32.mrf.mxu1 }
 0x266   : > { %v1611_v42 = vmax.f32 %v1554_v37, 0.0  ;;  %v1447_v43 = vadd.f32 %v1446_v39, %v3962_v17  ;;  %v1634_v50 = vpack.c.bf16 %v1610_v38, %v1608_v44  ;;  %v1558_v55 = vadd.f32 %v1557_v36, %v1445_v45 }
 0x267   : > { %v1448_v46 = vpop.f32.mrf.mxu0  ;;  %v1561_v47 = vpop.f32.mrf.mxu1 }
 0x268   : > { %v1635_v48 = vpack.c.bf16 %v1611_v42, %v1609_v41  ;;  %v1449_v49 = vadd.f32 %v1448_v46, %v3966_v18  ;;  %v1560_v53 = vadd.f32 %v1559_v40, %v1447_v43  ;;  %v1612_v9 = vmax.f32 %v1558_v55, 0.0 }
 0x269   : > { %v1450_v51 = vpop.f32.mrf.mxu0  ;;  %v1563_v52 = vpop.f32.mrf.mxu1 }
 0x26a   : > { %v1562_v0 = vadd.f32 %v1561_v47, %v1449_v49  ;;  %v1451_v54 = vadd.f32 %v1450_v51, %v3962_v17  ;;  %1835 = vmatprep.mubr.bf16.mxu0 %v1635_v48  ;;  %v1613_v2 = vmax.f32 %v1560_v53, 0.0 }
 0x26b   : > { %v1454_v56 = vpop.f32.mrf.mxu0  ;;  %v1567_v57 = vpop.f32.mrf.mxu1  ;;  %1836 = vmatmul.mubr.bf16.gmra.mxu0 %v1634_v50 }
 0x26c   : > { %v1564_v58 = vadd.f32 %v1563_v52, %v1451_v54  ;;  %v1614_v61 = vmax.f32 %v1562_v0, 0.0  ;;  %v1455_v10 = vadd.f32 %v1454_v56, %v3966_v18 }
 0x26d   : > { %v1456_v63 = vpop.f32.mrf.mxu0  ;;  %v1569_v1 = vpop.f32.mrf.mxu1 }
 0x26e   : > { %v1615_v3 = vmax.f32 %v1564_v58, 0.0  ;;  %v1457_v8 = vadd.f32 %v1456_v63, %v3962_v17  ;;  %v1636_v4 = vpack.c.bf16 %v1614_v61, %v1612_v9  ;;  %v1568_v19 = vadd.f32 %v1567_v57, %v1455_v10 }
 0x26f   : > { %v1458_v6 = vpop.f32.mrf.mxu0  ;;  %v1571_v11 = vpop.f32.mrf.mxu1 }
 0x270   : > { %v1637_v7 = vpack.c.bf16 %v1615_v3, %v1613_v2  ;;  %v1459_v12 = vadd.f32 %v1458_v6, %v3966_v18  ;;  %v1570_v14 = vadd.f32 %v1569_v1, %v1457_v8  ;;  %v1616_v29 = vmax.f32 %v1568_v19, 0.0  ;;  %v3284_v6 = vld [vmem:[#allocation10 + $0x18] sm:$0xff]  }
 0x271   : > { %v1460_v5 = vpop.f32.mrf.mxu0  ;;  %v1573_v13 = vpop.f32.mrf.mxu1 }
 0x272   : > { %v1572_v15 = vadd.f32 %v1571_v11, %v1459_v12  ;;  %v1461_v16 = vadd.f32 %v1460_v5, %v3962_v17  ;;  %1843 = vmatprep.mubr.bf16.mxu0 %v1637_v7  ;;  %v1617_v26 = vmax.f32 %v1570_v14, 0.0  ;;  %v3286_v11 = vld [vmem:[#allocation10 + $0x8] sm:$0xff]   ;;  %v3287_v7 = vld [vmem:[#allocation10] sm:$0xff]   ;;  %v3288_v12 = vld [vmem:[#allocation11 + $0x38] sm:$0xff]  }
 0x273   : > { %v1464_v20 = vpop.f32.mrf.mxu0  ;;  %v1577_v21 = vpop.f32.mrf.mxu1  ;;  %1844 = vmatmul.mubr.bf16.gmra.mxu0 %v1636_v4  ;;  %v4003_v14 = vld [vmem:[%s4124_s7 + $0x6] ss:$0 sm:$0xff] }
 0x274   : > { %v1574_v22 = vadd.f32 %v1573_v13, %v1461_v16  ;;  %v1618_v23 = vmax.f32 %v1572_v15, 0.0  ;;  %v1465_v60 = vadd.f32 %v1464_v20, %v3966_v18 }
 0x275   : > { %v1466_v24 = vpop.f32.mrf.mxu0  ;;  %v1579_v25 = vpop.f32.mrf.mxu1 }
 0x276   : > { %v1619_v27 = vmax.f32 %v1574_v22, 0.0  ;;  %v1467_v28 = vadd.f32 %v1466_v24, %v3962_v17  ;;  %v1638_v32 = vpack.c.bf16 %v1618_v23, %v1616_v29  ;;  %v1578_v38 = vadd.f32 %v1577_v21, %v1465_v60 }
 0x277   : > { %v1468_v30 = vpop.f32.mrf.mxu0  ;;  %v1581_v59 = vpop.f32.mrf.mxu1 }
 0x278   : > { %v1639_v62 = vpack.c.bf16 %v1619_v27, %v1617_v26  ;;  %v1469_v31 = vadd.f32 %v1468_v30, %v3966_v18  ;;  %v1580_v35 = vadd.f32 %v1579_v25, %v1467_v28  ;;  %v1620_v48 = vmax.f32 %v1578_v38, 0.0 }
 0x279   : > { %v1470_v33 = vpop.f32.mrf.mxu0  ;;  %v1583_v34 = vpop.f32.mrf.mxu1 }
 0x27a   : > { %v1582_v36 = vadd.f32 %v1581_v59, %v1469_v31  ;;  %v1471_v37 = vadd.f32 %v1470_v33, %v3962_v17  ;;  %1851 = vmatprep.mubr.bf16.mxu0 %v1639_v62  ;;  %v1621_v45 = vmax.f32 %v1580_v35, 0.0 }
 0x27b   : > { %v1474_v39 = vpop.f32.mrf.mxu0  ;;  %v1587_v40 = vpop.f32.mrf.mxu1  ;;  %1852 = vmatmul.mubr.bf16.gmra.mxu0 %v1638_v32 }
 0x27c   : > { %v1584_v41 = vadd.f32 %v1583_v34, %v1471_v37  ;;  %v1622_v42 = vmax.f32 %v1582_v36, 0.0  ;;  %v1475_v49 = vadd.f32 %v1474_v39, %v3966_v18  ;;  %v3289_v37 = vld [vmem:[#allocation11 + $0x30] sm:$0xff]  }
 0x27d   : > { %v1476_v43 = vpop.f32.mrf.mxu0  ;;  %v1589_v44 = vpop.f32.mrf.mxu1 }
 0x27e   : > { %v1623_v46 = vmax.f32 %v1584_v41, 0.0  ;;  %v1477_v47 = vadd.f32 %v1476_v43, %v3962_v17  ;;  %v1640_v0 = vpack.c.bf16 %v1622_v42, %v1620_v48  ;;  %v1588_v58 = vadd.f32 %v1587_v40, %v1475_v49  ;;  %v3290_v43 = vld [vmem:[#allocation11 + $0x28] sm:$0xff]  }
 0x27f   : > { %v1478_v50 = vpop.f32.mrf.mxu0  ;;  %v1591_v51 = vpop.f32.mrf.mxu1 }
 0x280   : > { %v1641_v52 = vpack.c.bf16 %v1623_v46, %v1621_v45  ;;  %v1479_v53 = vadd.f32 %v1478_v50, %v3966_v18  ;;  %v1590_v55 = vadd.f32 %v1589_v44, %v1477_v47  ;;  %v1624_v8 = vmax.f32 %v1588_v58, 0.0  ;;  %v3283_v18 = vld [vmem:[#allocation10 + $0x20] sm:$0xff]  }
 0x281   : > { %v1480_v54 = vpop.f32.mrf.mxu0  ;;  %v1593_v61 = vpop.f32.mrf.mxu1  ;;  %2898 = vmatprep.subr.bf16.mxu1 %v3283_v18  ;;  %v3291_v50 = vld [vmem:[#allocation11 + $0x20] sm:$0xff]  }
 0x282   : > { %v1592_v56 = vadd.f32 %v1591_v51, %v1479_v53  ;;  %v1481_v57 = vadd.f32 %v1480_v54, %v3962_v17  ;;  %1859 = vmatprep.mubr.bf16.mxu0 %v1641_v52  ;;  %v1625_v2 = vmax.f32 %v1590_v55, 0.0  ;;  %2899 = vmatpush3.bf16.msra.mxu1 %v3283_v18  ;;  %v3285_v17 = vld [vmem:[#allocation10 + $0x10] sm:$0xff]   ;;  %v3292_v55 = vld [vmem:[#allocation11 + $0x18] sm:$0xff]  }
 0x283   : > { %1860 = vmatmul.mubr.bf16.gmra.mxu0 %v1640_v0  ;;  %2900 = vmatprep.subr.bf16.mxu1 %v3284_v6 }
 0x284   : > { %v1594_v63 = vadd.f32 %v1593_v61, %v1481_v57  ;;  %v1626_v1 = vmax.f32 %v1592_v56, 0.0 }
 0x286   : > { %v1627_v3 = vmax.f32 %v1594_v63, 0.0  ;;  %v1642_v10 = vpack.c.bf16 %v1626_v1, %v1624_v8  ;;  %2901 = vmatpush3.bf16.msra.mxu1 %v3284_v6 }
 0x287   : > { %2902 = vmatprep.subr.bf16.mxu1 %v3285_v17 }
 0x288   : > { %v1643_v9 = vpack.c.bf16 %v1627_v3, %v1625_v2 }
 0x28a   : > { %1867 = vmatprep.mubr.bf16.mxu0 %v1643_v9  ;;  %2903 = vmatpush3.bf16.msra.mxu1 %v3285_v17 }
 0x28b   : > { %1868 = vmatmul.mubr.bf16.gmra.mxu0 %v1642_v10  ;;  %2904 = vmatprep.subr.bf16.mxu1 %v3286_v11 }
 0x28e   : > { %2905 = vmatpush3.bf16.msra.mxu1 %v3286_v11 }
 0x28f   : > { %2906 = vmatprep.subr.bf16.mxu1 %v3287_v7 }
 0x292   : > { %2907 = vmatpush3.bf16.msra.mxu1 %v3287_v7 }
 0x293   : > { %2924 = vmatprep.subr.bf16.mxu1 %v3288_v12 }
 0x313   : > { %v2796_v4 = vpop.f32.mrf.mxu0 }
 0x315   : > { %v2797_v5 = vpop.f32.mrf.mxu0 }
 0x316   : > { %v2798_v13 = vadd.f32 %v2797_v5, %v2796_v4 }
 0x317   : > { %v2799_v15 = vpop.f32.mrf.mxu0 }
 0x318   : > { %v1814_v19 = vadd.f32 %v2798_v13, %v4003_v14 }
 0x319   : > { %v2800_v16 = vpop.f32.mrf.mxu0 }
 0x31a   : > { %v2801_v20 = vadd.f32 %v2800_v16, %v2799_v15  ;;  %v1876_v24 = vmax.f32 %v1814_v19, 0.0 }
 0x31b   : > { %v2802_v21 = vpop.f32.mrf.mxu0 }
 0x31c   : > { %v1817_v22 = vadd.f32 %v2801_v20, %v4003_v14 }
 0x31d   : > { %v2803_v23 = vpop.f32.mrf.mxu0 }
 0x31e   : > { %v1877_v25 = vmax.f32 %v1817_v22, 0.0  ;;  %v2804_v26 = vadd.f32 %v2803_v23, %v2802_v21 }
 0x31f   : > { %v2805_v27 = vpop.f32.mrf.mxu0 }
 0x320   : > { %v1892_v28 = vpack.c.bf16 %v1877_v25, %v1876_v24  ;;  %v1822_v60 = vadd.f32 %v2804_v26, %v4003_v14 }
 0x321   : > { %v2806_v29 = vpop.f32.mrf.mxu0 }
 0x322   : > { %v2807_v30 = vadd.f32 %v2806_v29, %v2805_v27  ;;  %2908 = vmatprep.mubr.bf16.mxu1 %v1892_v28  ;;  %v1878_v32 = vmax.f32 %v1822_v60, 0.0 }
 0x323   : > { %v2808_v59 = vpop.f32.mrf.mxu0 }
 0x324   : > { %v1825_v62 = vadd.f32 %v2807_v30, %v4003_v14 }
 0x325   : > { %v2809_v31 = vpop.f32.mrf.mxu0 }
 0x326   : > { %v1879_v33 = vmax.f32 %v1825_v62, 0.0  ;;  %v2810_v34 = vadd.f32 %v2809_v31, %v2808_v59 }
 0x327   : > { %v2811_v35 = vpop.f32.mrf.mxu0 }
 0x328   : > { %v1893_v36 = vpack.c.bf16 %v1879_v33, %v1878_v32  ;;  %v1830_v39 = vadd.f32 %v2810_v34, %v4003_v14 }
 0x329   : > { %v2812_v38 = vpop.f32.mrf.mxu0 }
 0x32a   : > { %v2813_v40 = vadd.f32 %v2812_v38, %v2811_v35  ;;  %2909 = vmatmul.mubr.bf16.vlgmr.msra.gmra.mxu1 %v1893_v36  ;;  %v1880_v45 = vmax.f32 %v1830_v39, 0.0 }
 0x32b   : > { %v2814_v41 = vpop.f32.mrf.mxu0  ;;  %2925 = vmatpush3.bf16.msra.mxu1 %v3288_v12 }
 0x32c   : > { %v1833_v42 = vadd.f32 %v2813_v40, %v4003_v14  ;;  %2926 = vmatprep.subr.bf16.mxu1 %v3289_v37  ;;  %v3293_v40 = vld [vmem:[#allocation11 + $0x10] sm:$0xff]  }
 0x32d   : > { %v2815_v44 = vpop.f32.mrf.mxu0 }
 0x32e   : > { %v1881_v46 = vmax.f32 %v1833_v42, 0.0  ;;  %v2816_v47 = vadd.f32 %v2815_v44, %v2814_v41  ;;  %v3294_v41 = vld [vmem:[#allocation11 + $0x8] sm:$0xff]   ;;  %v3295_v42 = vld [vmem:[#allocation11] sm:$0xff]   ;;  %v3297_v44 = vld [vmem:[#allocation13 + $0x30] sm:$0xff]  }
 0x32f   : > { %v2817_v48 = vpop.f32.mrf.mxu0  ;;  %2927 = vmatpush3.bf16.msra.mxu1 %v3289_v37 }
 0x330   : > { %v1894_v49 = vpack.c.bf16 %v1881_v46, %v1880_v45  ;;  %2928 = vmatprep.subr.bf16.mxu1 %v3290_v43  ;;  %v1838_v52 = vadd.f32 %v2816_v47, %v4003_v14  ;;  %v3299_v45 = vld [vmem:[#allocation13 + $0x20] sm:$0xff]   ;;  %v3300_v46 = vld [vmem:[#allocation13 + $0x18] sm:$0xff]  }
 0x331   : > { %v2818_v51 = vpop.f32.mrf.mxu0 }
 0x332   : > { %v2819_v53 = vadd.f32 %v2818_v51, %v2817_v48  ;;  %2912 = vmatprep.mubr.bf16.mxu1 %v1894_v49  ;;  %v1882_v57 = vmax.f32 %v1838_v52, 0.0  ;;  %v4024_v49 = vld [vmem:[%s4124_s7 + $0x7] ss:$0 sm:$0xff] }
 0x333   : > { %v2820_v0 = vpop.f32.mrf.mxu0  ;;  %2929 = vmatpush3.bf16.msra.mxu1 %v3290_v43  ;;  %v3296_v43 = vld [vmem:[#allocation13 + $0x38] sm:$0xff]  }
 0x334   : > { %v1841_v54 = vadd.f32 %v2819_v53, %v4003_v14  ;;  %2930 = vmatprep.subr.bf16.mxu1 %v3291_v50  ;;  %2956 = vmatprep.subr.bf16.mxu0 %v3296_v43 }
 0x335   : > { %v2821_v56 = vpop.f32.mrf.mxu0  ;;  %2957 = vmatpush3.bf16.msra.mxu0 %v3296_v43 }
 0x336   : > { %v1883_v58 = vmax.f32 %v1841_v54, 0.0  ;;  %v2822_v61 = vadd.f32 %v2821_v56, %v2820_v0  ;;  %2958 = vmatprep.subr.bf16.mxu0 %v3297_v44 }
 0x337   : > { %v2823_v63 = vpop.f32.mrf.mxu0  ;;  %2931 = vmatpush3.bf16.msra.mxu1 %v3291_v50 }
 0x338   : > { %v1895_v1 = vpack.c.bf16 %v1883_v58, %v1882_v57  ;;  %2932 = vmatprep.subr.bf16.mxu1 %v3292_v55  ;;  %v1846_v3 = vadd.f32 %v2822_v61, %v4003_v14 }
 0x339   : > { %v2824_v2 = vpop.f32.mrf.mxu0  ;;  %2959 = vmatpush3.bf16.msra.mxu0 %v3297_v44 }
 0x33a   : > { %v2825_v8 = vadd.f32 %v2824_v2, %v2823_v63  ;;  %2913 = vmatmul.mubr.bf16.gmra.mxu1 %v1895_v1  ;;  %v1884_v6 = vmax.f32 %v1846_v3, 0.0 }
 0x33b   : > { %v2826_v9 = vpop.f32.mrf.mxu0  ;;  %2933 = vmatpush3.bf16.msra.mxu1 %v3292_v55 }
 0x33c   : > { %v1849_v10 = vadd.f32 %v2825_v8, %v4003_v14  ;;  %2934 = vmatprep.subr.bf16.mxu1 %v3293_v40 }
 0x33d   : > { %v2827_v18 = vpop.f32.mrf.mxu0 }
 0x33e   : > { %v1885_v17 = vmax.f32 %v1849_v10, 0.0  ;;  %v2828_v11 = vadd.f32 %v2827_v18, %v2826_v9 }
 0x33f   : > { %v2829_v7 = vpop.f32.mrf.mxu0  ;;  %2935 = vmatpush3.bf16.msra.mxu1 %v3293_v40 }
 0x340   : > { %v1896_v12 = vpack.c.bf16 %v1885_v17, %v1884_v6  ;;  %v1854_v5 = vadd.f32 %v2828_v11, %v4003_v14  ;;  %2936 = vmatprep.subr.bf16.mxu1 %v3294_v41 }
 0x341   : > { %v2830_v4 = vpop.f32.mrf.mxu0 }
 0x342   : > { %v2831_v13 = vadd.f32 %v2830_v4, %v2829_v7  ;;  %2916 = vmatprep.mubr.bf16.mxu1 %v1896_v12  ;;  %v1886_v20 = vmax.f32 %v1854_v5, 0.0 }
 0x343   : > { %v2832_v15 = vpop.f32.mrf.mxu0  ;;  %2937 = vmatpush3.bf16.msra.mxu1 %v3294_v41  ;;  %v3301_v41 = vld [vmem:[#allocation13 + $0x10] sm:$0xff]  }
 0x344   : > { %v1857_v16 = vadd.f32 %v2831_v13, %v4003_v14  ;;  %2938 = vmatprep.subr.bf16.mxu1 %v3295_v42 }
 0x345   : > { %v2833_v19 = vpop.f32.mrf.mxu0 }
 0x346   : > { %v1887_v21 = vmax.f32 %v1857_v16, 0.0  ;;  %v2834_v22 = vadd.f32 %v2833_v19, %v2832_v15 }
 0x347   : > { %v2835_v23 = vpop.f32.mrf.mxu0  ;;  %2939 = vmatpush3.bf16.msra.mxu1 %v3295_v42  ;;  %v3302_v42 = vld [vmem:[#allocation13 + $0x8] sm:$0xff]  }
 0x348   : > { %v1897_v24 = vpack.c.bf16 %v1887_v21, %v1886_v20  ;;  %v1862_v26 = vadd.f32 %v2834_v22, %v4003_v14  ;;  %2988 = vmatprep.subr.bf16.mxu1 %v3296_v43 }
 0x349   : > { %v2836_v25 = vpop.f32.mrf.mxu0 }
 0x34a   : > { %v2837_v27 = vadd.f32 %v2836_v25, %v2835_v23  ;;  %2917 = vmatmul.mubr.bf16.gmra.mxu1 %v1897_v24  ;;  %v1888_v30 = vmax.f32 %v1862_v26, 0.0 }
 0x34b   : > { %v2838_v28 = vpop.f32.mrf.mxu0 }
 0x34c   : > { %v1865_v29 = vadd.f32 %v2837_v27, %v4003_v14 }
 0x34d   : > { %v2839_v60 = vpop.f32.mrf.mxu0 }
 0x34e   : > { %v1889_v59 = vmax.f32 %v1865_v29, 0.0  ;;  %v2840_v62 = vadd.f32 %v2839_v60, %v2838_v28 }
 0x34f   : > { %v2841_v31 = vpop.f32.mrf.mxu0 }
 0x350   : > { %v1898_v32 = vpack.c.bf16 %v1889_v59, %v1888_v30  ;;  %v1870_v34 = vadd.f32 %v2840_v62, %v4003_v14 }
 0x351   : > { %v2842_v33 = vpop.f32.mrf.mxu0 }
 0x352   : > { %v2843_v35 = vadd.f32 %v2842_v33, %v2841_v31  ;;  %2920 = vmatprep.mubr.bf16.mxu1 %v1898_v32  ;;  %v1890_v37 = vmax.f32 %v1870_v34, 0.0 }
 0x354   : > { %v1873_v36 = vadd.f32 %v2843_v35, %v4003_v14  ;;  %v3298_v14 = vld [vmem:[#allocation13 + $0x28] sm:$0xff]  }
 0x355   : > { %2960 = vmatprep.subr.bf16.mxu0 %v3298_v14 }
 0x356   : > { %v1891_v38 = vmax.f32 %v1873_v36, 0.0  ;;  %2961 = vmatpush3.bf16.msra.mxu0 %v3298_v14 }
 0x357   : > { %2962 = vmatprep.subr.bf16.mxu0 %v3299_v45 }
 0x358   : > { %v1899_v39 = vpack.c.bf16 %v1891_v38, %v1890_v37 }
 0x35a   : > { %2921 = vmatmul.mubr.bf16.gmra.mxu1 %v1899_v39  ;;  %2963 = vmatpush3.bf16.msra.mxu0 %v3299_v45 }
 0x35b   : > { %2964 = vmatprep.subr.bf16.mxu0 %v3300_v46 }
 0x35e   : > { %2965 = vmatpush3.bf16.msra.mxu0 %v3300_v46 }
 0x35f   : > { %2966 = vmatprep.subr.bf16.mxu0 %v3301_v41 }
 0x362   : > { %2967 = vmatpush3.bf16.msra.mxu0 %v3301_v41 }
 0x363   : > { %2968 = vmatprep.subr.bf16.mxu0 %v3302_v42 }
 0x366   : > { %2969 = vmatpush3.bf16.msra.mxu0 %v3302_v42 }
 0x3ea   : > { %v2910_v47 = vpop.f32.mrf.mxu1 }
 0x3eb   : > { %v2014_v53 = vadd.f32 %v2910_v47, %v4024_v49 }
 0x3ec   : > { %v2005_v48 = vpop.f32.mrf.mxu1 }
 0x3ed   : > { %v2006_v51 = vadd.f32 %v4024_v49, %v2005_v48  ;;  %v2070_v58 = vmax.f32 %v2014_v53, 0.0 }
 0x3ee   : > { %v2911_v50 = vpop.f32.mrf.mxu1 }
 0x3ef   : > { %v2017_v52 = vadd.f32 %v2911_v50, %v4024_v49  ;;  %v2068_v56 = vmax.f32 %v2006_v51, 0.0 }
 0x3f0   : > { %v2008_v0 = vpop.f32.mrf.mxu1 }
 0x3f1   : > { %v2009_v54 = vadd.f32 %v4024_v49, %v2008_v0  ;;  %v2071_v55 = vmax.f32 %v2017_v52, 0.0 }
 0x3f3   : > { %v2069_v57 = vmax.f32 %v2009_v54, 0.0  ;;  %v2085_v63 = vpack.c.bf16 %v2071_v55, %v2070_v58 }
 0x3f5   : > { %v2084_v61 = vpack.c.bf16 %v2069_v57, %v2068_v56 }
 0x3f7   : > { %2940 = vmatprep.mubr.bf16.mxu1 %v2084_v61 }
 0x3f8   : > { %2941 = vmatmul.mubr.bf16.vlgmr.msra.gmra.mxu1 %v2085_v63 }
 0x3f9   : > { %2996 = vmatpush3.bf16.msra.mxu1 %v3296_v43  ;;  %v3303_v43 = vld [vmem:[#allocation13] sm:$0xff]  }
 0x3fa   : > { %v2914_v1 = vpop.f32.mrf.mxu1  ;;  %2989 = vmatprep.subr.bf16.mxu1 %v3297_v44  ;;  %2970 = vmatprep.subr.bf16.mxu0 %v3303_v43 }
 0x3fb   : > { %v2030_v10 = vadd.f32 %v2914_v1, %v4024_v49  ;;  %2971 = vmatpush3.bf16.msra.mxu0 %v3303_v43 }
 0x3fc   : > { %v2021_v2 = vpop.f32.mrf.mxu1 }
 0x3fd   : > { %2997 = vmatpush3.bf16.msra.mxu1 %v3297_v44  ;;  %v2022_v8 = vadd.f32 %v4024_v49, %v2021_v2  ;;  %v2074_v12 = vmax.f32 %v2030_v10, 0.0 }
 0x3fe   : > { %v2915_v3 = vpop.f32.mrf.mxu1  ;;  %2990 = vmatprep.subr.bf16.mxu1 %v3298_v14 }
 0x3ff   : > { %v2033_v9 = vadd.f32 %v2915_v3, %v4024_v49  ;;  %v2072_v11 = vmax.f32 %v2022_v8, 0.0 }
 0x400   : > { %v2024_v18 = vpop.f32.mrf.mxu1 }
 0x401   : > { %v2025_v6 = vadd.f32 %v4024_v49, %v2024_v18  ;;  %2998 = vmatpush3.bf16.msra.mxu1 %v3298_v14  ;;  %v2075_v17 = vmax.f32 %v2033_v9, 0.0 }
 0x402   : > { %2991 = vmatprep.subr.bf16.mxu1 %v3299_v45 }
 0x403   : > { %v2073_v7 = vmax.f32 %v2025_v6, 0.0  ;;  %v2087_v5 = vpack.c.bf16 %v2075_v17, %v2074_v12 }
 0x405   : > { %v2086_v4 = vpack.c.bf16 %v2073_v7, %v2072_v11  ;;  %2999 = vmatpush3.bf16.msra.mxu1 %v3299_v45  ;;  %v2755_v45 = vld [vmem:[%s4124_s7 + $0x8] ss:$0 sm:$0xff] }
 0x406   : > { %2992 = vmatprep.subr.bf16.mxu1 %v3300_v46 }
 0x407   : > { %2944 = vmatprep.mubr.bf16.mxu1 %v2086_v4 }
 0x408   : > { %2945 = vmatmul.mubr.bf16.gmra.mxu1 %v2087_v5 }
 0x409   : > { %3000 = vmatpush3.bf16.msra.mxu1 %v3300_v46 }
 0x40a   : > { %v2918_v13 = vpop.f32.mrf.mxu1  ;;  %2993 = vmatprep.subr.bf16.mxu1 %v3301_v41 }
 0x40b   : > { %v2046_v21 = vadd.f32 %v2918_v13, %v4024_v49 }
 0x40c   : > { %v2037_v15 = vpop.f32.mrf.mxu1 }
 0x40d   : > { %v2038_v19 = vadd.f32 %v4024_v49, %v2037_v15  ;;  %v2078_v27 = vmax.f32 %v2046_v21, 0.0  ;;  %3001 = vmatpush3.bf16.msra.mxu1 %v3301_v41 }
 0x40e   : > { %v2919_v16 = vpop.f32.mrf.mxu1  ;;  %2994 = vmatprep.subr.bf16.mxu1 %v3302_v42 }
 0x40f   : > { %v2049_v20 = vadd.f32 %v2919_v16, %v4024_v49  ;;  %v2076_v25 = vmax.f32 %v2038_v19, 0.0 }
 0x410   : > { %v2040_v22 = vpop.f32.mrf.mxu1 }
 0x411   : > { %v2041_v23 = vadd.f32 %v4024_v49, %v2040_v22  ;;  %v2079_v24 = vmax.f32 %v2049_v20, 0.0  ;;  %3002 = vmatpush3.bf16.msra.mxu1 %v3302_v42 }
 0x412   : > { %2995 = vmatprep.subr.bf16.mxu1 %v3303_v43 }
 0x413   : > { %v2077_v26 = vmax.f32 %v2041_v23, 0.0  ;;  %v2089_v29 = vpack.c.bf16 %v2079_v24, %v2078_v27 }
 0x415   : > { %v2088_v28 = vpack.c.bf16 %v2077_v26, %v2076_v25  ;;  %3003 = vmatpush3.bf16.msra.mxu1 %v3303_v43 }
 0x417   : > { %2948 = vmatprep.mubr.bf16.mxu1 %v2088_v28 }
 0x418   : > { %2949 = vmatmul.mubr.bf16.gmra.mxu1 %v2089_v29 }
 0x41a   : > { %v2922_v60 = vpop.f32.mrf.mxu1 }
 0x41b   : > { %v2062_v32 = vadd.f32 %v2922_v60, %v4024_v49 }
 0x41c   : > { %v2053_v30 = vpop.f32.mrf.mxu1 }
 0x41d   : > { %v2054_v62 = vadd.f32 %v4024_v49, %v2053_v30  ;;  %v2082_v38 = vmax.f32 %v2062_v32, 0.0 }
 0x41e   : > { %v2923_v59 = vpop.f32.mrf.mxu1 }
 0x41f   : > { %v2065_v31 = vadd.f32 %v2923_v59, %v4024_v49  ;;  %v2080_v36 = vmax.f32 %v2054_v62, 0.0 }
 0x420   : > { %v2056_v33 = vpop.f32.mrf.mxu1 }
 0x421   : > { %v2057_v34 = vadd.f32 %v4024_v49, %v2056_v33  ;;  %v2083_v35 = vmax.f32 %v2065_v31, 0.0 }
 0x423   : > { %v2081_v37 = vmax.f32 %v2057_v34, 0.0  ;;  %v2091_v40 = vpack.c.bf16 %v2083_v35, %v2082_v38 }
 0x425   : > { %v2090_v39 = vpack.c.bf16 %v2081_v37, %v2080_v36  ;;  %v2764_v37 = vld [vmem:[%s4124_s7 + $0x9] ss:$0 sm:$0xff] }
 0x427   : > { %2952 = vmatprep.mubr.bf16.mxu1 %v2090_v39 }
 0x428   : > { %2953 = vmatmul.mubr.bf16.gmra.mxu1 %v2091_v40 }
 0x4b8   : > { %v2942_v44 = vpop.f32.mrf.mxu1 }
 0x4b9   : > { %v2206_v49 = vadd.f32 %v2942_v44, %v2755_v45 }
 0x4ba   : > { %v2197_v14 = vpop.f32.mrf.mxu1 }
 0x4bb   : > { %v2198_v47 = vadd.f32 %v2755_v45, %v2197_v14  ;;  %v2262_v54 = vmax.f32 %v2206_v49, 0.0 }
 0x4bc   : > { %v2943_v46 = vpop.f32.mrf.mxu1 }
 0x4bd   : > { %v2209_v48 = vadd.f32 %v2943_v46, %v2755_v45  ;;  %v2260_v53 = vmax.f32 %v2198_v47, 0.0 }
 0x4be   : > { %v2200_v50 = vpop.f32.mrf.mxu1 }
 0x4bf   : > { %v2201_v51 = vadd.f32 %v2755_v45, %v2200_v50  ;;  %v2263_v52 = vmax.f32 %v2209_v48, 0.0 }
 0x4c1   : > { %v2261_v0 = vmax.f32 %v2201_v51, 0.0  ;;  %v2277_v56 = vpack.c.bf16 %v2263_v52, %v2262_v54 }
 0x4c3   : > { %v2276_v55 = vpack.c.bf16 %v2261_v0, %v2260_v53 }
 0x4c5   : > { %2972 = vmatprep.mubr.bf16.mxu0 %v2276_v55 }
 0x4c6   : > { %2973 = vmatmul.mubr.bf16.vlgmr.msra.gmra.mxu0 %v2277_v56 }
 0x4c8   : > { %v2946_v57 = vpop.f32.mrf.mxu1 }
 0x4c9   : > { %v2222_v2 = vadd.f32 %v2946_v57, %v2755_v45 }
 0x4ca   : > { %v2213_v58 = vpop.f32.mrf.mxu1 }
 0x4cb   : > { %v2214_v63 = vadd.f32 %v2755_v45, %v2213_v58  ;;  %v2266_v6 = vmax.f32 %v2222_v2, 0.0 }
 0x4cc   : > { %v2947_v61 = vpop.f32.mrf.mxu1 }
 0x4cd   : > { %v2225_v1 = vadd.f32 %v2947_v61, %v2755_v45  ;;  %v2264_v10 = vmax.f32 %v2214_v63, 0.0 }
 0x4ce   : > { %v2216_v3 = vpop.f32.mrf.mxu1 }
 0x4cf   : > { %v2217_v8 = vadd.f32 %v2755_v45, %v2216_v3  ;;  %v2267_v9 = vmax.f32 %v2225_v1, 0.0 }
 0x4d1   : > { %v2265_v18 = vmax.f32 %v2217_v8, 0.0  ;;  %v2279_v11 = vpack.c.bf16 %v2267_v9, %v2266_v6 }
 0x4d3   : > { %v2278_v17 = vpack.c.bf16 %v2265_v18, %v2264_v10 }
 0x4d5   : > { %2976 = vmatprep.mubr.bf16.mxu0 %v2278_v17 }
 0x4d6   : > { %2977 = vmatmul.mubr.bf16.gmra.mxu0 %v2279_v11 }
 0x4d8   : > { %v2950_v7 = vpop.f32.mrf.mxu1 }
 0x4d9   : > { %v2238_v15 = vadd.f32 %v2950_v7, %v2755_v45 }
 0x4da   : > { %v2229_v12 = vpop.f32.mrf.mxu1 }
 0x4db   : > { %v2230_v5 = vadd.f32 %v2755_v45, %v2229_v12  ;;  %v2270_v23 = vmax.f32 %v2238_v15, 0.0 }
 0x4dc   : > { %v2951_v4 = vpop.f32.mrf.mxu1 }
 0x4dd   : > { %v2241_v13 = vadd.f32 %v2951_v4, %v2755_v45  ;;  %v2268_v21 = vmax.f32 %v2230_v5, 0.0 }
 0x4de   : > { %v2232_v16 = vpop.f32.mrf.mxu1 }
 0x4df   : > { %v2233_v19 = vadd.f32 %v2755_v45, %v2232_v16  ;;  %v2271_v20 = vmax.f32 %v2241_v13, 0.0 }
 0x4e1   : > { %v2269_v22 = vmax.f32 %v2233_v19, 0.0  ;;  %v2281_v25 = vpack.c.bf16 %v2271_v20, %v2270_v23 }
 0x4e3   : > { %v2280_v24 = vpack.c.bf16 %v2269_v22, %v2268_v21 }
 0x4e5   : > { %2980 = vmatprep.mubr.bf16.mxu1 %v2280_v24 }
 0x4e6   : > { %2981 = vmatmul.mubr.bf16.vlgmr.msra.gmra.mxu1 %v2281_v25 }
 0x4e8   : > { %v2954_v26 = vpop.f32.mrf.mxu1 }
 0x4e9   : > { %v2254_v30 = vadd.f32 %v2954_v26, %v2755_v45 }
 0x4ea   : > { %v2245_v27 = vpop.f32.mrf.mxu1 }
 0x4eb   : > { %v2246_v29 = vadd.f32 %v2755_v45, %v2245_v27  ;;  %v2274_v34 = vmax.f32 %v2254_v30, 0.0 }
 0x4ec   : > { %v2955_v28 = vpop.f32.mrf.mxu1 }
 0x4ed   : > { %v2257_v60 = vadd.f32 %v2955_v28, %v2755_v45  ;;  %v2272_v32 = vmax.f32 %v2246_v29, 0.0 }
 0x4ee   : > { %v2248_v59 = vpop.f32.mrf.mxu1 }
 0x4ef   : > { %v2249_v62 = vadd.f32 %v2755_v45, %v2248_v59  ;;  %v2275_v31 = vmax.f32 %v2257_v60, 0.0 }
 0x4f1   : > { %v2273_v33 = vmax.f32 %v2249_v62, 0.0  ;;  %v2283_v36 = vpack.c.bf16 %v2275_v31, %v2274_v34 }
 0x4f3   : > { %v2282_v35 = vpack.c.bf16 %v2273_v33, %v2272_v32 }
 0x4f5   : > { %2984 = vmatprep.mubr.bf16.mxu1 %v2282_v35 }
 0x4f6   : > { %2985 = vmatmul.mubr.bf16.gmra.mxu1 %v2283_v36 }
 0x586   : > { %v2974_v38 = vpop.f32.mrf.mxu0 }
 0x587   : > { %v2398_v39 = vadd.f32 %v2974_v38, %v2764_v37 }
 0x588   : > { %v2389_v40 = vpop.f32.mrf.mxu0 }
 0x589   : > { %2454 = vst [vmem:[%s4050_s22 + $0x10] sm:$0xff] %v2398_v39  ;;  %v2390_v41 = vadd.f32 %v2764_v37, %v2389_v40 }
 0x58a   : > { %v2975_v42 = vpop.f32.mrf.mxu0 }
 0x58b   : > { %2452 = vst [vmem:[%s4050_s22] sm:$0xff] %v2390_v41  ;;  %v2401_v43 = vadd.f32 %v2975_v42, %v2764_v37 }
 0x58c   : > { %v2392_v44 = vpop.f32.mrf.mxu0 }
 0x58d   : > { %2455 = vst [vmem:[%s4050_s22 + $0x18] sm:$0xff] %v2401_v43  ;;  %v2393_v14 = vadd.f32 %v2764_v37, %v2392_v44 }
 0x58f   : > { %2453 = vst [vmem:[%s4050_s22 + $0x8] sm:$0xff] %v2393_v14 }
 0x596   : > { %v2978_v45 = vpop.f32.mrf.mxu0 }
 0x597   : > { %v2414_v46 = vadd.f32 %v2978_v45, %v2764_v37 }
 0x598   : > { %v2405_v47 = vpop.f32.mrf.mxu0 }
 0x599   : > { %2458 = vst [vmem:[%s4050_s22 + $0x30] sm:$0xff] %v2414_v46  ;;  %v2406_v48 = vadd.f32 %v2764_v37, %v2405_v47 }
 0x59a   : > { %v2979_v49 = vpop.f32.mrf.mxu0 }
 0x59b   : > { %2456 = vst [vmem:[%s4050_s22 + $0x20] sm:$0xff] %v2406_v48  ;;  %v2417_v50 = vadd.f32 %v2979_v49, %v2764_v37 }
 0x59c   : > { %v2408_v51 = vpop.f32.mrf.mxu0 }
 0x59d   : > { %2459 = vst [vmem:[%s4050_s22 + $0x38] sm:$0xff] %v2417_v50  ;;  %v2409_v52 = vadd.f32 %v2764_v37, %v2408_v51 }
 0x59f   : > { %2457 = vst [vmem:[%s4050_s22 + $0x28] sm:$0xff] %v2409_v52 }
 0x5a6   : > { %v2982_v53 = vpop.f32.mrf.mxu1 }
 0x5a7   : > { %v2430_v0 = vadd.f32 %v2982_v53, %v2764_v37 }
 0x5a8   : > { %v2421_v54 = vpop.f32.mrf.mxu1 }
 0x5a9   : > { %2462 = vst [vmem:[%s4050_s22 + $0x50] sm:$0xff] %v2430_v0  ;;  %v2422_v55 = vadd.f32 %v2764_v37, %v2421_v54 }
 0x5aa   : > { %v2983_v56 = vpop.f32.mrf.mxu1 }
 0x5ab   : > { %2460 = vst [vmem:[%s4050_s22 + $0x40] sm:$0xff] %v2422_v55  ;;  %v2433_v57 = vadd.f32 %v2983_v56, %v2764_v37 }
 0x5ac   : > { %v2424_v58 = vpop.f32.mrf.mxu1 }
 0x5ad   : > { %2463 = vst [vmem:[%s4050_s22 + $0x58] sm:$0xff] %v2433_v57  ;;  %v2425_v61 = vadd.f32 %v2764_v37, %v2424_v58 }
 0x5af   : > { %2461 = vst [vmem:[%s4050_s22 + $0x48] sm:$0xff] %v2425_v61 }
 0x5b6   : > { %v2986_v63 = vpop.f32.mrf.mxu1 }
 0x5b7   : > { %v2446_v1 = vadd.f32 %v2986_v63, %v2764_v37 }
 0x5b8   : > { %v2437_v2 = vpop.f32.mrf.mxu1 }
 0x5b9   : > { %2466 = vst [vmem:[%s4050_s22 + $0x70] sm:$0xff] %v2446_v1  ;;  %v2438_v3 = vadd.f32 %v2764_v37, %v2437_v2 }
 0x5ba   : > { %v2987_v8 = vpop.f32.mrf.mxu1 }
 0x5bb   : > { %2464 = vst [vmem:[%s4050_s22 + $0x60] sm:$0xff] %v2438_v3  ;;  %v2449_v9 = vadd.f32 %v2987_v8, %v2764_v37 }
 0x5bc   : > { %v2440_v10 = vpop.f32.mrf.mxu1 }
 0x5bd   : > { %2467 = vst [vmem:[%s4050_s22 + $0x78] sm:$0xff] %v2449_v9  ;;  %v2441_v18 = vadd.f32 %v2764_v37, %v2440_v10 }
 0x5bf   : > { %2465 = vst [vmem:[%s4050_s22 + $0x68] sm:$0xff] %v2441_v18 }
 0x5c0   : > { %3501 = shalt.err (!%p3498_p3)
}
 0x5c1   : > { %s3502_s21 = scalar_lea.hbm %s4071_s9, 2048  ;;  %s3506_s24 = scalar_lea.hbm %s4125_s8, 6144 }
 0x5c2   : > { %p3503_p5 = scmp.ne.s32.totalorder %s4071_s9, %s3502_s21  ;;  %p3507_p7 = scmp.lt.s32.totalorder %s4071_s9, %s4125_s8 }
 0x5c3   : > { %p3508_p9 = scmp.lt.s32.totalorder %s3506_s24, %s3502_s21 }
 0x5c4   : > { %p3504_p4 = pnand %p3503_p5, %p4154_p13 }
 0x5c5   : > { %p3509_p11 = por %p3508_p9, %p3507_p7 }
 0x5c6   : > { %p3505_p8 = pneg %p3504_p4 }
 0x5c8   : > { %p3510_p12 = pnand %p3509_p11, %p3505_p8 }
 0x5ca   : > { %3513 = shalt.err (!%p3510_p12)
}
 0x5cb   : > { %s3581_s23 = smov 128   ;;  %s3582_s25 = smov 8  }
 0x5cc   : > { %3030 = dma.vmem_to_hbm [thread:$0]  (%p4154_p13), %s4073_s12, 2048, %s4071_s9, %s2469_s10, %s3581_s23, %s3581_s23, %s3582_s25  }
 0x5cd PF: > { %p3072_p0 = scmp.ge.s32.totalorder %s3564_s30, 2  ;;  %s2497_s11 = sand.u32 1, %s3552_s27  }
 0x5ce   : > { %p4155_p2 = scmp.ne.s32.totalorder %s4142_s14, 0  ;;  %s2498_s15 = scalar_lea.sflag [#allocation4], %s2497_s11 }
 0x5d0   : > { %p3056_p6 = pnand %p3072_p0, %p4155_p2 }
 0x5d2   : > { %p3057_p10 = pneg %p3056_p6 }
 0x5d4   : > { %3547 = dma.done.wait (%p3057_p10), %s2498_s15, 2048  }
 0x5d5   : > { %3549 = vsyncadd (%p3057_p10), %s2498_s15, 4294965248  ;;  %p24_p1 = scmp.ge.s32.totalorder %s3741_s18, 5   ;;  %s4156_s27 = smov %s3556_s28 }
 0x5d6   : > { %s4157_s28 = smov %s3560_s29  ;;  %s4158_s29 = smov %s3752_s13 }
 0x5d7   : > { %s4159_s30 = smov %s3741_s18  ;;  %26 = sbr.rel (!%p24_p1) target bundleno = 11 (0xb), region = 121 }
 0x5dc   :  { %2503 = vsyncpa [#allocation3], 1 }
 0x5dd   :  { %2505 = vsyncpa [#allocation3 + $0x1], 1 }
 0x5de   :  { %2506 = vsyncpa [#allocation6], 1 }
 0x5df   :  { %2507 = vsyncpa [#allocation9], 1 }
 0x5e0   :  { %2508 = vsyncpa [#allocation12], 1 }
 0x5e1   :  { %2509 = vsyncpa [#allocation4], 1 }
 0x5e2   :  { %2511 = vsyncpa [#allocation4 + $0x1], 1 }

</bundles_post_ra>
